<compile_context>
chip_gen: v6e
topology: v6e:2x2x1
jax: 0.10.0
libtpu: 0.0.40
codegen_flags: <defaults>
</compile_context>

<pallas_src>
import functools

import jax
import jax.numpy as jnp
from jax.experimental import pallas as pl
from jax.experimental.pallas import tpu as pltpu


# --------------------------------------------------------------------------- #
# Kernel
# --------------------------------------------------------------------------- #
def _layernorm(v, g, b, eps=1e-5):
    """PyTorch nn.LayerNorm over the last axis (biased variance, eps=1e-5).

    One-pass form: mean and mean-of-squares are two *independent* lane
    reductions (they can overlap on the XLU) instead of the dependent
    mean -> centered-square -> mean chain.
    """
    mu = jnp.mean(v, axis=-1, keepdims=True)
    ms = jnp.mean(v * v, axis=-1, keepdims=True)
    var = ms - mu * mu
    return (v - mu) * jax.lax.rsqrt(var + eps) * g + b


def _tformer_kernel(x_ref, clspos_ref, px_ref, pvec_ref,
                    wqkv_ref, wp_ref, w1_ref, w2_ref, o_ref):
    """One grid step: `bb` patches end-to-end (LN -> attention -> proj -> FF).

    x_ref / px_ref : (bb*P, C)  patch pixels / local_pos rows 1..P, flattened
                                 batch-major (row b*P + p == patch b, pixel p)
    clspos_ref     : (bb, C)    cls token + local_pos row 0 (pre-added once)
    pvec_ref       : (10, W)    packed LN affines and all linear biases
    wqkv_ref       : (C, 3C)    fused [Wq | Wk | Wv], pre-transposed (in, out)
    wp/w1/w2_ref   : proj / FF weights, pre-transposed to (in, out)
    o_ref          : (bb, C)    output cls token
    """
    f32 = jnp.float32
    bb, C = clspos_ref.shape
    P = x_ref.shape[0] // bb
    H = w1_ref.shape[1]
    scale = float(C) ** -0.5                    # num_heads = 1 -> head_dim = C

    pv = pvec_ref[...]
    g0, b0 = pv[0:1, :C], pv[1:2, :C]           # outer LayerNorm
    g1, b1 = pv[2:3, :C], pv[3:4, :C]           # pre-attention LayerNorm
    g2, b2 = pv[4:5, :C], pv[5:6, :C]           # pre-FF LayerNorm
    bp, c2 = pv[6:7, :C], pv[7:8, :C]           # proj bias / FF second bias
    bqkv = pv[8:9, :3 * C]                      # fused [bq | bk | bv]
    c1 = pv[9:10, :H]                           # FF first bias

    # ---- cat([cls, x], dim=1) + local_pos as ONE (bb*(P+1), C) slab ---------
    # cls rows first, then the bb*P pixel rows; both row counts are multiples
    # of 8, so the sublane concat is tile-aligned.
    y = jnp.concatenate(
        [clspos_ref[...], x_ref[...].astype(f32) + px_ref[...]], axis=0)

    # ---- outer LayerNorm, then the attention block's LayerNorm --------------
    a = _layernorm(_layernorm(y, g0, b0), g1, b1)

    # ---- fused QKV projection: one MXU matmul, 3C output lanes, one bias add
    # (q is also produced for the pixel rows and simply unused: cheaper than
    # running a second, separate matmul for the cls rows.)
    qkv = jnp.dot(a, wqkv_ref[...], preferred_element_type=f32) + bqkv
    q = qkv[:bb, 0:C]                            # cls-token query
    k0 = qkv[:bb, C:2 * C]                       # cls-token key / value
    v0 = qkv[:bb, 2 * C:3 * C]
    kx = qkv[bb:, C:2 * C].reshape(bb, P, C)     # pixel keys / values
    vx = qkv[bb:, 2 * C:3 * C].reshape(bb, P, C)

    # ---- cls-query cross-attention ------------------------------------------
    # (the reference module applies NO softmax; reproduced faithfully)
    s0 = jnp.sum(q * k0, axis=-1, keepdims=True) * scale          # (bb, 1)
    sx = jnp.sum(q[:, None, :] * kx, axis=-1) * scale             # (bb, P)
    o = s0 * v0 + jnp.sum(sx[:, :, None] * vx, axis=1)            # attn @ v
    o = jnp.dot(o, wp_ref[...], preferred_element_type=f32) + bp  # proj

    # ---- Residual(LayerNorm(FeedForward)) on the cls token ------------------
    f = _layernorm(o, g2, b2)
    h = jax.nn.sigmoid(jnp.dot(f, w1_ref[...], preferred_element_type=f32) + c1)
    f2 = jax.nn.sigmoid(jnp.dot(h, w2_ref[...], preferred_element_type=f32) + c2)

    # Module output == cat([f2 + o, x], 1)[:, 0:1] == f2 + o.
    o_ref[...] = (f2 + o).astype(o_ref.dtype)
    # TODO(synk): train-mode dropout (attn_drop / proj_drop / FF dropouts) is
    #             identity in eval mode and intentionally omitted.


# --------------------------------------------------------------------------- #
# One-time preparation + jitted apply
# --------------------------------------------------------------------------- #
def _round_up(n, m):
    return ((n + m - 1) // m) * m


def _pick_block_b(B, P, C):
    """Patches processed per grid step.

    Grid steps are a serial loop on one TensorCore with ~0.35 us fixed cost
    each, so take the whole batch in ONE step whenever the f32 working set
    (double-buffered x/px inputs + LN / fused-QKV temporaries, ~12 live copies
    of the (block_b*(P+1), C) slab) fits a ~6 MiB budget — comfortably inside
    the scoped-VMEM default on v5e/v6e and on v7x's halved 64 MiB VMEM.
    """
    seq_bytes = (P + 1) * C * 4
    cap = max(8, (6 << 20) // max(seq_bytes * 12, 1))
    if B <= cap:
        return _round_up(B, 8)
    # TODO(synk): on v7x, prefer an even number of grid steps so
    # dimension_semantics=("parallel",) shards them across both TensorCores.
    return max(8, (cap // 8) * 8)


def make_t_former(params, *, block_b=None):
    """Prepare T_Former parameters ONCE and return a jitted apply(x)->(B,1,C)."""
    f32 = jnp.float32
    cls = jnp.asarray(params["cls"], f32)            # (B, 1, C)
    lpos = jnp.asarray(params["local_pos"], f32)     # (B, P+1, C)
    B, _, C = cls.shape
    P = lpos.shape[1] - 1
    H = params["w1"].shape[0]

    # ---- batch tiling --------------------------------------------------------
    if block_b is None:
        block_b = _pick_block_b(B, P, C)
    block_b = _round_up(max(8, min(block_b, _round_up(B, 8))), 8)
    B_pad = _round_up(B, block_b)
    steps = B_pad // block_b

    # ---- parameter packing (hoisted out of the per-call path) ---------------
    cls_pos = cls[:, 0, :] + lpos[:, 0, :]           # pre-add cls + pos row 0
    px = lpos[:, 1:, :]
    if B_pad != B:
        cls_pos = jnp.pad(cls_pos, ((0, B_pad - B), (0, 0)))
        px = jnp.pad(px, ((0, B_pad - B), (0, 0), (0, 0)))
    px_flat = px.reshape(B_pad * P, C)

    wqkv = jnp.concatenate(
        [jnp.asarray(params[k], f32).T for k in ("wq", "wk", "wv")], axis=1)
    wp = jnp.asarray(params["wp"], f32).T            # (C, C)
    w1 = jnp.asarray(params["w1"], f32).T            # (C, H)
    w2 = jnp.asarray(params["w2"], f32).T            # (H, C)

    W = max(3 * C, H)

    def row(*vs):
        v = jnp.concatenate([jnp.asarray(u, f32).reshape(-1) for u in vs])
        return jnp.pad(v, (0, W - v.shape[0]))

    pvec = jnp.stack([
        row(params["norm_g"]), row(params["norm_b"]),
        row(params["attn_ln_g"]), row(params["attn_ln_b"]),
        row(params["ff_ln_g"]), row(params["ff_ln_b"]),
        row(params["bp"]), row(params["c2"]),
        row(params["bq"], params["bk"], params["bv"]),
        row(params["c1"]),
    ])                                               # (10, W)

    # Materialize the prepared operands now (one-time cost).
    cls_pos, px_flat, pvec, wqkv, wp, w1, w2 = jax.block_until_ready(
        (cls_pos, px_flat, pvec, wqkv, wp, w1, w2))

    # ---- pallas_call built once ---------------------------------------------
    bmap = lambda i: (i, 0)
    pmap = lambda i: (0, 0)
    call = pl.pallas_call(
        _tformer_kernel,
        out_shape=jax.ShapeDtypeStruct((B_pad, C), f32),
        grid=(steps,),
        in_specs=[
            pl.BlockSpec((block_b * P, C), bmap),    # x  (flattened)
            pl.BlockSpec((block_b, C), bmap),        # cls + local_pos row 0
            pl.BlockSpec((block_b * P, C), bmap),    # local_pos rows 1..P
            pl.BlockSpec(pvec.shape, pmap),          # packed biases / LN affines
            pl.BlockSpec(wqkv.shape, pmap),          # fused QKV weight
            pl.BlockSpec(wp.shape, pmap),
            pl.BlockSpec(w1.shape, pmap),
            pl.BlockSpec(w2.shape, pmap),
        ],
        out_specs=pl.BlockSpec((block_b, C), bmap),
        compiler_params=pltpu.CompilerParams(
            dimension_semantics=("parallel",),
            vmem_limit_bytes=32 * 1024 * 1024),
    )

    @jax.jit
    def apply(x):
        assert x.shape == (B, P, C), (x.shape, (B, P, C))
        xf = x.astype(f32)
        if B_pad != B:
            xf = jnp.pad(xf, ((0, B_pad - B), (0, 0), (0, 0)))
        xf = xf.reshape(B_pad * P, C)                # free metadata reshape
        out = call(xf, cls_pos, px_flat, pvec, wqkv, wp, w1, w2)
        return out[:B].reshape(B, 1, C)

    return apply


def t_former_forward(x, params, *, block_b=None):
    """One-shot convenience wrapper (prefer make_t_former for repeated calls)."""
    return make_t_former(params, block_b=block_b)(x)


# --------------------------------------------------------------------------- #
# Test harness
# --------------------------------------------------------------------------- #
def init_params(key, endmember, hidden_dim, num_patches, patch_pixel):
    """Deterministic parameters mirroring T_Former's state (PyTorch layouts)."""
    C, H = endmember, hidden_dim
    ks = jax.random.split(key, 20)
    n = lambda k, shape, s=1.0: s * jax.random.normal(k, shape, dtype=jnp.float32)
    return dict(
        cls=n(ks[0], (num_patches, 1, C)),
        local_pos=n(ks[1], (num_patches, patch_pixel + 1, C)),
        norm_g=1.0 + n(ks[2], (C,), 0.1), norm_b=n(ks[3], (C,), 0.1),
        attn_ln_g=1.0 + n(ks[4], (C,), 0.1), attn_ln_b=n(ks[5], (C,), 0.1),
        wq=n(ks[6], (C, C), 0.1), bq=n(ks[7], (C,), 0.1),
        wk=n(ks[8], (C, C), 0.1), bk=n(ks[9], (C,), 0.1),
        wv=n(ks[10], (C, C), 0.1), bv=n(ks[11], (C,), 0.1),
        wp=n(ks[12], (C, C), 0.1), bp=n(ks[13], (C,), 0.1),
        ff_ln_g=1.0 + n(ks[14], (C,), 0.1), ff_ln_b=n(ks[15], (C,), 0.1),
        w1=n(ks[16], (H, C), 0.1), c1=n(ks[17], (H,), 0.1),
        w2=n(ks[18], (C, H), 0.1), c2=n(ks[19], (C,), 0.1),
    )


def _reference(x, params):
    """Pure-JAX reference mirroring the PyTorch T_Former forward (eval mode)."""
    f32 = jnp.float32
    C = x.shape[-1]
    mm = functools.partial(jnp.matmul, precision=jax.lax.Precision.HIGHEST)

    def ln(v, g, b):
        mu = jnp.mean(v, axis=-1, keepdims=True)
        var = jnp.mean(jnp.square(v - mu), axis=-1, keepdims=True)
        return (v - mu) * jax.lax.rsqrt(var + 1e-5) * g + b

    xh = jnp.concatenate([params["cls"], x.astype(f32)], axis=1) + params["local_pos"]
    xh = ln(xh, params["norm_g"], params["norm_b"])

    a = ln(xh, params["attn_ln_g"], params["attn_ln_b"])
    q = mm(a[:, 0:1], params["wq"].T) + params["bq"]
    k = mm(a, params["wk"].T) + params["bk"]
    v = mm(a, params["wv"].T) + params["bv"]
    attn = mm(q, jnp.swapaxes(k, -1, -2)) * (C ** -0.5)      # no softmax (as in reference)
    o = mm(attn, v)                                           # (B, 1, C)
    o = mm(o, params["wp"].T) + params["bp"]

    f = ln(o, params["ff_ln_g"], params["ff_ln_b"])
    h = jax.nn.sigmoid(mm(f, params["w1"].T) + params["c1"])
    f2 = jax.nn.sigmoid(mm(h, params["w2"].T) + params["c2"])
    return f2 + o                       # cat([out, x], 1)[:, 0:1] == out


if __name__ == "__main__":
    key = jax.random.PRNGKey(0)
    endmember, hidden_dim = 32, 32
    num_patches, patch_pixel = 16, 8

    kx, kp = jax.random.split(key)
    x = jax.random.normal(kx, (num_patches, patch_pixel, endmember), dtype=jnp.float32)
    params = init_params(kp, endmember, hidden_dim, num_patches, patch_pixel)

    apply_fn = make_t_former(params)          # one-time parameter prep + compile setup
    out = jax.block_until_ready(apply_fn(x))

    ref = _reference(x, params)
    assert out.shape == ref.shape == (num_patches, 1, endmember), (out.shape, ref.shape)
    max_err = float(jnp.max(jnp.abs(out - ref)))
    # Kernel uses default MXU precision for its f32 matmuls (reference uses
    # Precision.HIGHEST); at C=H=32 the gap is far below this tolerance.
    assert jnp.allclose(out, ref, atol=2e-3, rtol=2e-3), f"max_err={max_err}"

    print("KERNEL_OK")
</pallas_src>

<mosaic_0001>
module attributes {stable_mosaic.version = 11 : i64} {
  func.func @_tformer_kernel(%arg0: i32, %arg1: memref<128x32xf32, #tpu.memory_space<vmem>>, %arg2: memref<16x32xf32, #tpu.memory_space<vmem>>, %arg3: memref<128x32xf32, #tpu.memory_space<vmem>>, %arg4: memref<10x96xf32, #tpu.memory_space<vmem>>, %arg5: memref<32x96xf32, #tpu.memory_space<vmem>>, %arg6: memref<32x32xf32, #tpu.memory_space<vmem>>, %arg7: memref<32x32xf32, #tpu.memory_space<vmem>>, %arg8: memref<32x32xf32, #tpu.memory_space<vmem>>, %arg9: memref<16x32xf32, #tpu.memory_space<vmem>>) attributes {dimension_semantics = [#tpu.dimension_semantics<parallel>], iteration_bounds = array<i64: 1>, scalar_prefetch = 0 : i64, scratch_operands = 0 : i64, tpu.core_type = #tpu.core_type<tc>, window_params = [{transform_indices = @transform_0, window_bounds = array<i64: 128, 32>}, {transform_indices = @transform_1, window_bounds = array<i64: 16, 32>}, {transform_indices = @transform_2, window_bounds = array<i64: 128, 32>}, {pipeline_mode = #tpu.pipeline_mode<synchronous>, transform_indices = @transform_3, window_bounds = array<i64: 10, 96>}, {pipeline_mode = #tpu.pipeline_mode<synchronous>, transform_indices = @transform_4, window_bounds = array<i64: 32, 96>}, {pipeline_mode = #tpu.pipeline_mode<synchronous>, transform_indices = @transform_5, window_bounds = array<i64: 32, 32>}, {pipeline_mode = #tpu.pipeline_mode<synchronous>, transform_indices = @transform_6, window_bounds = array<i64: 32, 32>}, {pipeline_mode = #tpu.pipeline_mode<synchronous>, transform_indices = @transform_7, window_bounds = array<i64: 32, 32>}, {transform_indices = @transform_8, window_bounds = array<i64: 16, 32>}]} {
    %c0 = arith.constant 0 : index
    %c0_0 = arith.constant 0 : index
    %0 = vector.load %arg4[%c0, %c0_0] : memref<10x96xf32, #tpu.memory_space<vmem>>, vector<10x96xf32>
    %1 = vector.extract_strided_slice %0 {offsets = [0, 0], sizes = [1, 32], strides = [1, 1]} : vector<10x96xf32> to vector<1x32xf32>
    %2 = vector.extract_strided_slice %0 {offsets = [1, 0], sizes = [1, 32], strides = [1, 1]} : vector<10x96xf32> to vector<1x32xf32>
    %3 = vector.extract_strided_slice %0 {offsets = [2, 0], sizes = [1, 32], strides = [1, 1]} : vector<10x96xf32> to vector<1x32xf32>
    %4 = vector.extract_strided_slice %0 {offsets = [3, 0], sizes = [1, 32], strides = [1, 1]} : vector<10x96xf32> to vector<1x32xf32>
    %5 = vector.extract_strided_slice %0 {offsets = [4, 0], sizes = [1, 32], strides = [1, 1]} : vector<10x96xf32> to vector<1x32xf32>
    %6 = vector.extract_strided_slice %0 {offsets = [5, 0], sizes = [1, 32], strides = [1, 1]} : vector<10x96xf32> to vector<1x32xf32>
    %7 = vector.extract_strided_slice %0 {offsets = [6, 0], sizes = [1, 32], strides = [1, 1]} : vector<10x96xf32> to vector<1x32xf32>
    %8 = vector.extract_strided_slice %0 {offsets = [7, 0], sizes = [1, 32], strides = [1, 1]} : vector<10x96xf32> to vector<1x32xf32>
    %9 = vector.extract_strided_slice %0 {offsets = [8, 0], sizes = [1, 96], strides = [1, 1]} : vector<10x96xf32> to vector<1x96xf32>
    %10 = vector.extract_strided_slice %0 {offsets = [9, 0], sizes = [1, 32], strides = [1, 1]} : vector<10x96xf32> to vector<1x32xf32>
    %c0_1 = arith.constant 0 : index
    %c0_2 = arith.constant 0 : index
    %11 = vector.load %arg2[%c0_1, %c0_2] : memref<16x32xf32, #tpu.memory_space<vmem>>, vector<16x32xf32>
    %c0_3 = arith.constant 0 : index
    %c0_4 = arith.constant 0 : index
    %12 = vector.load %arg1[%c0_3, %c0_4] : memref<128x32xf32, #tpu.memory_space<vmem>>, vector<128x32xf32>
    %c0_5 = arith.constant 0 : index
    %c0_6 = arith.constant 0 : index
    %13 = vector.load %arg3[%c0_5, %c0_6] : memref<128x32xf32, #tpu.memory_space<vmem>>, vector<128x32xf32>
    %14 = arith.addf %12, %13 : vector<128x32xf32>
    %15 = tpu.concatenate %11, %14 in 0 : vector<16x32xf32>, vector<128x32xf32> -> vector<144x32xf32>
    %cst = arith.constant dense<0.000000e+00> : vector<144xf32>
    %16 = vector.multi_reduction <add>, %15, %cst [1] : vector<144x32xf32> to vector<144xf32>
    %17 = vector.shape_cast %16 : vector<144xf32> to vector<144x1xf32>
    %cst_7 = arith.constant 3.200000e+01 : f32
    %18 = vector.broadcast %cst_7 : f32 to vector<144x1xf32>
    %19 = arith.divf %17, %18 : vector<144x1xf32>
    %20 = arith.mulf %15, %15 : vector<144x32xf32>
    %cst_8 = arith.constant dense<0.000000e+00> : vector<144xf32>
    %21 = vector.multi_reduction <add>, %20, %cst_8 [1] : vector<144x32xf32> to vector<144xf32>
    %22 = vector.shape_cast %21 : vector<144xf32> to vector<144x1xf32>
    %cst_9 = arith.constant 3.200000e+01 : f32
    %23 = vector.broadcast %cst_9 : f32 to vector<144x1xf32>
    %24 = arith.divf %22, %23 : vector<144x1xf32>
    %25 = arith.mulf %19, %19 : vector<144x1xf32>
    %26 = arith.subf %24, %25 : vector<144x1xf32>
    %27 = vector.broadcast %19 : vector<144x1xf32> to vector<144x32xf32>
    %28 = arith.subf %15, %27 : vector<144x32xf32>
    %cst_10 = arith.constant 9.99999974E-6 : f32
    %29 = vector.broadcast %cst_10 : f32 to vector<144x1xf32>
    %30 = arith.addf %26, %29 : vector<144x1xf32>
    %31 = math.rsqrt %30 : vector<144x1xf32>
    %32 = vector.broadcast %31 : vector<144x1xf32> to vector<144x32xf32>
    %33 = arith.mulf %28, %32 : vector<144x32xf32>
    %34 = vector.broadcast %1 : vector<1x32xf32> to vector<144x32xf32>
    %35 = arith.mulf %33, %34 : vector<144x32xf32>
    %36 = vector.broadcast %2 : vector<1x32xf32> to vector<144x32xf32>
    %37 = arith.addf %35, %36 : vector<144x32xf32>
    %cst_11 = arith.constant dense<0.000000e+00> : vector<144xf32>
    %38 = vector.multi_reduction <add>, %37, %cst_11 [1] : vector<144x32xf32> to vector<144xf32>
    %39 = vector.shape_cast %38 : vector<144xf32> to vector<144x1xf32>
    %cst_12 = arith.constant 3.200000e+01 : f32
    %40 = vector.broadcast %cst_12 : f32 to vector<144x1xf32>
    %41 = arith.divf %39, %40 : vector<144x1xf32>
    %42 = arith.mulf %37, %37 : vector<144x32xf32>
    %cst_13 = arith.constant dense<0.000000e+00> : vector<144xf32>
    %43 = vector.multi_reduction <add>, %42, %cst_13 [1] : vector<144x32xf32> to vector<144xf32>
    %44 = vector.shape_cast %43 : vector<144xf32> to vector<144x1xf32>
    %cst_14 = arith.constant 3.200000e+01 : f32
    %45 = vector.broadcast %cst_14 : f32 to vector<144x1xf32>
    %46 = arith.divf %44, %45 : vector<144x1xf32>
    %47 = arith.mulf %41, %41 : vector<144x1xf32>
    %48 = arith.subf %46, %47 : vector<144x1xf32>
    %49 = vector.broadcast %41 : vector<144x1xf32> to vector<144x32xf32>
    %50 = arith.subf %37, %49 : vector<144x32xf32>
    %cst_15 = arith.constant 9.99999974E-6 : f32
    %51 = vector.broadcast %cst_15 : f32 to vector<144x1xf32>
    %52 = arith.addf %48, %51 : vector<144x1xf32>
    %53 = math.rsqrt %52 : vector<144x1xf32>
    %54 = vector.broadcast %53 : vector<144x1xf32> to vector<144x32xf32>
    %55 = arith.mulf %50, %54 : vector<144x32xf32>
    %56 = vector.broadcast %3 : vector<1x32xf32> to vector<144x32xf32>
    %57 = arith.mulf %55, %56 : vector<144x32xf32>
    %58 = vector.broadcast %4 : vector<1x32xf32> to vector<144x32xf32>
    %59 = arith.addf %57, %58 : vector<144x32xf32>
    %c0_16 = arith.constant 0 : index
    %c0_17 = arith.constant 0 : index
    %60 = vector.load %arg5[%c0_16, %c0_17] : memref<32x96xf32, #tpu.memory_space<vmem>>, vector<32x96xf32>
    %cst_18 = arith.constant dense<0.000000e+00> : vector<144x96xf32>
    %61 = tpu.matmul %59, %60, %cst_18 {dimension_numbers = #tpu.dot_dimension_numbers<[1], [0], [0], [1], [0, 0, 1, 1], [], []>} : vector<144x32xf32>, vector<32x96xf32>, vector<144x96xf32> -> vector<144x96xf32>
    %62 = vector.broadcast %9 : vector<1x96xf32> to vector<144x96xf32>
    %63 = arith.addf %61, %62 : vector<144x96xf32>
    %64 = vector.extract_strided_slice %63 {offsets = [0, 0], sizes = [16, 32], strides = [1, 1]} : vector<144x96xf32> to vector<16x32xf32>
    %65 = vector.extract_strided_slice %63 {offsets = [0, 32], sizes = [16, 32], strides = [1, 1]} : vector<144x96xf32> to vector<16x32xf32>
    %66 = vector.extract_strided_slice %63 {offsets = [0, 64], sizes = [16, 32], strides = [1, 1]} : vector<144x96xf32> to vector<16x32xf32>
    %67 = vector.extract_strided_slice %63 {offsets = [16, 32], sizes = [128, 32], strides = [1, 1]} : vector<144x96xf32> to vector<128x32xf32>
    %68 = vector.shape_cast %67 : vector<128x32xf32> to vector<16x8x32xf32>
    %69 = vector.extract_strided_slice %63 {offsets = [16, 64], sizes = [128, 32], strides = [1, 1]} : vector<144x96xf32> to vector<128x32xf32>
    %70 = vector.shape_cast %69 : vector<128x32xf32> to vector<16x8x32xf32>
    %71 = arith.mulf %64, %65 : vector<16x32xf32>
    %cst_19 = arith.constant dense<0.000000e+00> : vector<16xf32>
    %72 = vector.multi_reduction <add>, %71, %cst_19 [1] : vector<16x32xf32> to vector<16xf32>
    %73 = vector.shape_cast %72 : vector<16xf32> to vector<16x1xf32>
    %cst_20 = arith.constant 0.176776692 : f32
    %74 = vector.broadcast %cst_20 : f32 to vector<16x1xf32>
    %75 = arith.mulf %73, %74 : vector<16x1xf32>
    %76 = vector.shape_cast %64 : vector<16x32xf32> to vector<16x1x32xf32>
    %77 = vector.broadcast %76 : vector<16x1x32xf32> to vector<16x8x32xf32>
    %78 = arith.mulf %77, %68 : vector<16x8x32xf32>
    %cst_21 = arith.constant dense<0.000000e+00> : vector<16x8xf32>
    %79 = vector.multi_reduction <add>, %78, %cst_21 [2] : vector<16x8x32xf32> to vector<16x8xf32>
    %cst_22 = arith.constant 0.176776692 : f32
    %80 = vector.broadcast %cst_22 : f32 to vector<16x8xf32>
    %81 = arith.mulf %79, %80 : vector<16x8xf32>
    %82 = vector.broadcast %75 : vector<16x1xf32> to vector<16x32xf32>
    %83 = arith.mulf %82, %66 : vector<16x32xf32>
    %84 = vector.shape_cast %81 : vector<16x8xf32> to vector<16x8x1xf32>
    %85 = vector.broadcast %84 : vector<16x8x1xf32> to vector<16x8x32xf32>
    %86 = arith.mulf %85, %70 : vector<16x8x32xf32>
    %cst_23 = arith.constant dense<0.000000e+00> : vector<16x32xf32>
    %87 = vector.multi_reduction <add>, %86, %cst_23 [1] : vector<16x8x32xf32> to vector<16x32xf32>
    %88 = arith.addf %83, %87 : vector<16x32xf32>
    %c0_24 = arith.constant 0 : index
    %c0_25 = arith.constant 0 : index
    %89 = vector.load %arg6[%c0_24, %c0_25] : memref<32x32xf32, #tpu.memory_space<vmem>>, vector<32x32xf32>
    %cst_26 = arith.constant dense<0.000000e+00> : vector<16x32xf32>
    %90 = tpu.matmul %88, %89, %cst_26 {dimension_numbers = #tpu.dot_dimension_numbers<[1], [0], [0], [1], [0, 0, 1, 1], [], []>} : vector<16x32xf32>, vector<32x32xf32>, vector<16x32xf32> -> vector<16x32xf32>
    %91 = vector.broadcast %7 : vector<1x32xf32> to vector<16x32xf32>
    %92 = arith.addf %90, %91 : vector<16x32xf32>
    %cst_27 = arith.constant dense<0.000000e+00> : vector<16xf32>
    %93 = vector.multi_reduction <add>, %92, %cst_27 [1] : vector<16x32xf32> to vector<16xf32>
    %94 = vector.shape_cast %93 : vector<16xf32> to vector<16x1xf32>
    %cst_28 = arith.constant 3.200000e+01 : f32
    %95 = vector.broadcast %cst_28 : f32 to vector<16x1xf32>
    %96 = arith.divf %94, %95 : vector<16x1xf32>
    %97 = arith.mulf %92, %92 : vector<16x32xf32>
    %cst_29 = arith.constant dense<0.000000e+00> : vector<16xf32>
    %98 = vector.multi_reduction <add>, %97, %cst_29 [1] : vector<16x32xf32> to vector<16xf32>
    %99 = vector.shape_cast %98 : vector<16xf32> to vector<16x1xf32>
    %cst_30 = arith.constant 3.200000e+01 : f32
    %100 = vector.broadcast %cst_30 : f32 to vector<16x1xf32>
    %101 = arith.divf %99, %100 : vector<16x1xf32>
    %102 = arith.mulf %96, %96 : vector<16x1xf32>
    %103 = arith.subf %101, %102 : vector<16x1xf32>
    %104 = vector.broadcast %96 : vector<16x1xf32> to vector<16x32xf32>
    %105 = arith.subf %92, %104 : vector<16x32xf32>
    %cst_31 = arith.constant 9.99999974E-6 : f32
    %106 = vector.broadcast %cst_31 : f32 to vector<16x1xf32>
    %107 = arith.addf %103, %106 : vector<16x1xf32>
    %108 = math.rsqrt %107 : vector<16x1xf32>
    %109 = vector.broadcast %108 : vector<16x1xf32> to vector<16x32xf32>
    %110 = arith.mulf %105, %109 : vector<16x32xf32>
    %111 = vector.broadcast %5 : vector<1x32xf32> to vector<16x32xf32>
    %112 = arith.mulf %110, %111 : vector<16x32xf32>
    %113 = vector.broadcast %6 : vector<1x32xf32> to vector<16x32xf32>
    %114 = arith.addf %112, %113 : vector<16x32xf32>
    %c0_32 = arith.constant 0 : index
    %c0_33 = arith.constant 0 : index
    %115 = vector.load %arg7[%c0_32, %c0_33] : memref<32x32xf32, #tpu.memory_space<vmem>>, vector<32x32xf32>
    %cst_34 = arith.constant dense<0.000000e+00> : vector<16x32xf32>
    %116 = tpu.matmul %114, %115, %cst_34 {dimension_numbers = #tpu.dot_dimension_numbers<[1], [0], [0], [1], [0, 0, 1, 1], [], []>} : vector<16x32xf32>, vector<32x32xf32>, vector<16x32xf32> -> vector<16x32xf32>
    %117 = vector.broadcast %10 : vector<1x32xf32> to vector<16x32xf32>
    %118 = arith.addf %116, %117 : vector<16x32xf32>
    %119 = arith.negf %118 : vector<16x32xf32>
    %120 = math.exp %119 : vector<16x32xf32>
    %cst_35 = arith.constant 1.000000e+00 : f32
    %121 = vector.broadcast %cst_35 : f32 to vector<16x32xf32>
    %122 = arith.addf %121, %120 : vector<16x32xf32>
    %123 = arith.divf %121, %122 : vector<16x32xf32>
    %c0_36 = arith.constant 0 : index
    %c0_37 = arith.constant 0 : index
    %124 = vector.load %arg8[%c0_36, %c0_37] : memref<32x32xf32, #tpu.memory_space<vmem>>, vector<32x32xf32>
    %cst_38 = arith.constant dense<0.000000e+00> : vector<16x32xf32>
    %125 = tpu.matmul %123, %124, %cst_38 {dimension_numbers = #tpu.dot_dimension_numbers<[1], [0], [0], [1], [0, 0, 1, 1], [], []>} : vector<16x32xf32>, vector<32x32xf32>, vector<16x32xf32> -> vector<16x32xf32>
    %126 = vector.broadcast %8 : vector<1x32xf32> to vector<16x32xf32>
    %127 = arith.addf %125, %126 : vector<16x32xf32>
    %128 = arith.negf %127 : vector<16x32xf32>
    %129 = math.exp %128 : vector<16x32xf32>
    %cst_39 = arith.constant 1.000000e+00 : f32
    %130 = vector.broadcast %cst_39 : f32 to vector<16x32xf32>
    %131 = arith.addf %130, %129 : vector<16x32xf32>
    %132 = arith.divf %130, %131 : vector<16x32xf32>
    %133 = arith.addf %132, %92 : vector<16x32xf32>
    %c0_40 = arith.constant 0 : index
    %c0_41 = arith.constant 0 : index
    %134 = vector.load %arg9[%c0_40, %c0_41] : memref<16x32xf32, #tpu.memory_space<vmem>>, vector<16x32xf32>
    tpu.vector_store %arg9[%c0_40, %c0_41], %133 {strides = array<i32>} : memref<16x32xf32, #tpu.memory_space<vmem>>, vector<16x32xf32>,
    return
  }
  func.func @transform_0(%arg0: i32) -> (i32, i32) {
    %c0_i32 = arith.constant 0 : i32
    %c0_i32_0 = arith.constant 0 : i32
    return %arg0, %c0_i32 : i32, i32
  }
  func.func @transform_1(%arg0: i32) -> (i32, i32) {
    %c0_i32 = arith.constant 0 : i32
    %c0_i32_0 = arith.constant 0 : i32
    return %arg0, %c0_i32 : i32, i32
  }
  func.func @transform_2(%arg0: i32) -> (i32, i32) {
    %c0_i32 = arith.constant 0 : i32
    %c0_i32_0 = arith.constant 0 : i32
    return %arg0, %c0_i32 : i32, i32
  }
  func.func @transform_3(%arg0: i32) -> (i32, i32) {
    %c0_i32 = arith.constant 0 : i32
    %c0_i32_0 = arith.constant 0 : i32
    %c0_i32_1 = arith.constant 0 : i32
    return %c0_i32, %c0_i32_0 : i32, i32
  }
  func.func @transform_4(%arg0: i32) -> (i32, i32) {
    %c0_i32 = arith.constant 0 : i32
    %c0_i32_0 = arith.constant 0 : i32
    %c0_i32_1 = arith.constant 0 : i32
    return %c0_i32, %c0_i32_0 : i32, i32
  }
  func.func @transform_5(%arg0: i32) -> (i32, i32) {
    %c0_i32 = arith.constant 0 : i32
    %c0_i32_0 = arith.constant 0 : i32
    %c0_i32_1 = arith.constant 0 : i32
    return %c0_i32, %c0_i32_0 : i32, i32
  }
  func.func @transform_6(%arg0: i32) -> (i32, i32) {
    %c0_i32 = arith.constant 0 : i32
    %c0_i32_0 = arith.constant 0 : i32
    %c0_i32_1 = arith.constant 0 : i32
    return %c0_i32, %c0_i32_0 : i32, i32
  }
  func.func @transform_7(%arg0: i32) -> (i32, i32) {
    %c0_i32 = arith.constant 0 : i32
    %c0_i32_0 = arith.constant 0 : i32
    %c0_i32_1 = arith.constant 0 : i32
    return %c0_i32, %c0_i32_0 : i32, i32
  }
  func.func @transform_8(%arg0: i32) -> (i32, i32) {
    %c0_i32 = arith.constant 0 : i32
    %c0_i32_0 = arith.constant 0 : i32
    return %arg0, %c0_i32 : i32, i32
  }
}

</mosaic_0001>

<bundles_post_ra>
// kernel: apply.1
= control target key start
LH: loop header
LB: loop body
LE: loop exit
PB: predicated region body
PF: predicated region fallthrough
CT: control target
= control target key end

     0   :  { %13 = vsyncpa [#allocation3], 0  ;;  %s3278_s0 = inlined_call_operand.hbm [shape: f32[128,32], index: 0, kind: input, shape index: {}]   ;;  %s3279_s1 = inlined_call_operand.hbm [shape: f32[16,32], index: 1, kind: input, shape index: {}]   ;;  %s3280_s2 = inlined_call_operand.hbm [shape: f32[128,32], index: 2, kind: input, shape index: {}]   ;;  %s3281_s3 = inlined_call_operand.hbm [shape: f32[10,96], index: 3, kind: input, shape index: {}]   ;;  %s3282_s4 = inlined_call_operand.hbm [shape: f32[32,96], index: 4, kind: input, shape index: {}]   ;;  %s3283_s5 = inlined_call_operand.hbm [shape: f32[32,32], index: 5, kind: input, shape index: {}]   ;;  %s3284_s6 = inlined_call_operand.hbm [shape: f32[32,32], index: 6, kind: input, shape index: {}]   ;;  %s3285_s7 = inlined_call_operand.hbm [shape: f32[32,32], index: 7, kind: input, shape index: {}]   ;;  %s3286_s8 = inlined_call_operand.hbm [shape: f32[16,32], index: 8, kind: output, shape index: {}]  }
   0x1   :  { %14 = vsyncpa [#allocation6], 0 }
   0x2   :  { %15 = vsyncpa [#allocation9], 0 }
   0x3   :  { %16 = vsyncpa [#allocation12], 0 }
   0x4   :  { %17 = vsyncpa [#allocation15], 0 }
   0x5   :  { %18 = vsyncpa [#allocation4], 0  ;;  %s2355_s27 = smov [#allocation5]   ;;  %s2356_s29 = smov [#allocation8]  }
   0x6   :  { %s36_s28 = sshll.u32 %s2355_s27, 4  ;;  %s60_s30 = sshll.u32 %s2356_s29, 4  ;;  %s37_s28 = int_to_ptr.vmem [resolvable:$true] %s36_s28  ;;  %s61_s30 = int_to_ptr.vmem [resolvable:$true] %s60_s30 }
   0x7   :  { %s2171_s9 = scalar_lea.vmem %s37_s28, 256  ;;  %p2176_p1 = scmp.lt.s32.totalorder %s37_s28, %s37_s28 }
   0x8   :  { %p2172_p0 = scmp.ne.s32.totalorder %s37_s28, %s2171_s9  ;;  %p2177_p2 = scmp.lt.s32.totalorder %s2171_s9, %s2171_s9 }
   0xa   :  { %p2178_p3 = por %p2177_p2, %p2176_p1 }
   0xc   :  { %p2179_p4 = pnand %p2178_p3, %p2172_p0 }
   0xe   :  { %2182 = shalt.err (!%p2179_p4)
}
   0xf   :  { %s2357_s10 = smov 128   ;;  %s2358_s11 = smov 8  }
  0x10   :  { %42 = dma.hbm_to_vmem [thread:$0]  %s3279_s1, 256, %s37_s28, [#allocation6], %s2357_s10, %s2357_s10, %s2358_s11  }
  0x11   :  { %s2191_s14 = scalar_lea.vmem %s61_s30, 256  ;;  %p2196_p6 = scmp.lt.s32.totalorder %s61_s30, %s61_s30 }
  0x12   :  { %p2192_p5 = scmp.ne.s32.totalorder %s61_s30, %s2191_s14  ;;  %p2197_p7 = scmp.lt.s32.totalorder %s2191_s14, %s2191_s14 }
  0x14   :  { %p2198_p8 = por %p2197_p7, %p2196_p6 }
  0x16   :  { %p2199_p9 = pnand %p2198_p8, %p2192_p5 }
  0x18   :  { %2202 = shalt.err (!%p2199_p9)
}
  0x19   :  { %66 = dma.hbm_to_vmem [thread:$0]  %s3281_s3, 256, %s61_s30, [#allocation9], %s2357_s10, %s2357_s10, %s2358_s11  }
  0x1a   :  { %s2359_s17 = smov [#allocation11]   ;;  %s2360_s19 = smov [#allocation2]  }
  0x1b   :  { %s84_s18 = sshll.u32 %s2359_s17, 4  ;;  %s24_s20 = sshll.u32 %s2360_s19, 4  ;;  %s85_s18 = int_to_ptr.vmem [resolvable:$true] %s84_s18  ;;  %s25_s20 = int_to_ptr.vmem [resolvable:$true] %s24_s20 }
  0x1c   :  { %s2211_s1 = scalar_lea.vmem %s85_s18, 512  ;;  %p2216_p11 = scmp.lt.s32.totalorder %s85_s18, %s85_s18 }
  0x1d   :  { %p2212_p10 = scmp.ne.s32.totalorder %s85_s18, %s2211_s1  ;;  %p2217_p12 = scmp.lt.s32.totalorder %s2211_s1, %s2211_s1 }
  0x1f   :  { %p2218_p13 = por %p2217_p12, %p2216_p11 }
  0x21   :  { %p2219_p0 = pnand %p2218_p13, %p2212_p10 }
  0x23   :  { %2222 = shalt.err (!%p2219_p0)
}
  0x24   :  { %90 = dma.hbm_to_vmem [thread:$0]  %s3283_s5, 512, %s85_s18, [#allocation12], %s2357_s10, %s2357_s10, %s2358_s11  }
  0x25   :  { %s2231_s3 = scalar_lea.vmem %s25_s20, 2048  ;;  %p2236_p2 = scmp.lt.s32.totalorder %s25_s20, %s25_s20 }
  0x26   :  { %p2232_p1 = scmp.ne.s32.totalorder %s25_s20, %s2231_s3  ;;  %p2237_p3 = scmp.lt.s32.totalorder %s2231_s3, %s2231_s3 }
  0x28   :  { %p2238_p4 = por %p2237_p3, %p2236_p2 }
  0x2a   :  { %p2239_p5 = pnand %p2238_p4, %p2232_p1 }
  0x2c   :  { %2242 = shalt.err (!%p2239_p5)
}
  0x2d   :  { %30 = dma.hbm_to_vmem [thread:$0]  %s3278_s0, 2048, %s25_s20, [#allocation3], %s2357_s10, %s2357_s10, %s2358_s11  }
  0x2e   :  { %s2361_s25 = smov [#allocation7]   ;;  %s2362_s27 = smov [#allocation10]  }
  0x2f   :  { %s48_s26 = sshll.u32 %s2361_s25, 4  ;;  %s72_s28 = sshll.u32 %s2362_s27, 4  ;;  %s49_s26 = int_to_ptr.vmem [resolvable:$true] %s48_s26  ;;  %s73_s28 = int_to_ptr.vmem [resolvable:$true] %s72_s28 }
  0x30   :  { %s2251_s5 = scalar_lea.vmem %s49_s26, 2048  ;;  %p2256_p7 = scmp.lt.s32.totalorder %s49_s26, %s49_s26 }
  0x31   :  { %p2252_p6 = scmp.ne.s32.totalorder %s49_s26, %s2251_s5  ;;  %p2257_p8 = scmp.lt.s32.totalorder %s2251_s5, %s2251_s5 }
  0x33   :  { %p2258_p9 = por %p2257_p8, %p2256_p7 }
  0x35   :  { %p2259_p10 = pnand %p2258_p9, %p2252_p6 }
  0x37   :  { %2262 = shalt.err (!%p2259_p10)
}
  0x38   :  { %54 = dma.hbm_to_vmem [thread:$0]  %s3280_s2, 2048, %s49_s26, [#allocation6], %s2357_s10, %s2357_s10, %s2358_s11  }
  0x39   :  { %s2271_s0 = scalar_lea.vmem %s73_s28, 512  ;;  %p2276_p12 = scmp.lt.s32.totalorder %s73_s28, %s73_s28 }
  0x3a   :  { %p2272_p11 = scmp.ne.s32.totalorder %s73_s28, %s2271_s0  ;;  %p2277_p13 = scmp.lt.s32.totalorder %s2271_s0, %s2271_s0 }
  0x3c   :  { %p2278_p0 = por %p2277_p13, %p2276_p12 }
  0x3e   :  { %p2279_p1 = pnand %p2278_p0, %p2272_p11 }
  0x40   :  { %2282 = shalt.err (!%p2279_p1)
}
  0x41   :  { %78 = dma.hbm_to_vmem [thread:$0]  %s3282_s4, 512, %s73_s28, [#allocation9], %s2357_s10, %s2357_s10, %s2358_s11  }
  0x42   :  { %s2363_s13 = smov [#allocation13]   ;;  %s2364_s15 = smov [#allocation14]  }
  0x43   :  { %s96_s14 = sshll.u32 %s2363_s13, 4  ;;  %s108_s16 = sshll.u32 %s2364_s15, 4  ;;  %s97_s14 = int_to_ptr.vmem [resolvable:$true] %s96_s14  ;;  %s109_s16 = int_to_ptr.vmem [resolvable:$true] %s108_s16 }
  0x44   :  { %s2291_s2 = scalar_lea.vmem %s97_s14, 512  ;;  %p2296_p3 = scmp.lt.s32.totalorder %s97_s14, %s97_s14 }
  0x45   :  { %p2292_p2 = scmp.ne.s32.totalorder %s97_s14, %s2291_s2  ;;  %p2297_p4 = scmp.lt.s32.totalorder %s2291_s2, %s2291_s2 }
  0x47   :  { %p2298_p5 = por %p2297_p4, %p2296_p3 }
  0x49   :  { %p2299_p6 = pnand %p2298_p5, %p2292_p2 }
  0x4b   :  { %2302 = shalt.err (!%p2299_p6)
}
  0x4c   :  { %102 = dma.hbm_to_vmem [thread:$0]  %s3284_s6, 512, %s97_s14, [#allocation12], %s2357_s10, %s2357_s10, %s2358_s11  }
  0x4d   :  { %s2311_s4 = scalar_lea.vmem %s109_s16, 512  ;;  %p2316_p8 = scmp.lt.s32.totalorder %s109_s16, %s109_s16 }
  0x4e   :  { %p2312_p7 = scmp.ne.s32.totalorder %s109_s16, %s2311_s4  ;;  %p2317_p9 = scmp.lt.s32.totalorder %s2311_s4, %s2311_s4 }
  0x50   :  { %p2318_p10 = por %p2317_p9, %p2316_p8 }
  0x52   :  { %p2319_p11 = pnand %p2318_p10, %p2312_p7 }
  0x54   :  { %2322 = shalt.err (!%p2319_p11)
}
  0x55   :  { %114 = dma.hbm_to_vmem [thread:$0]  %s3285_s7, 512, %s109_s16, [#allocation15], %s2357_s10, %s2357_s10, %s2358_s11  }
  0x56   :  { %2343 = dma.done.wait [#allocation3], 2048  }
  0x57   :  { %2344 = vsyncadd [#allocation3], 4294965248 }
  0x58   :  { %2345 = dma.done.wait [#allocation6], 2304  }
  0x59   :  { %2346 = vsyncadd [#allocation6], 4294964992 }
  0x5a   :  { %2347 = dma.done.wait [#allocation9], 768  }
  0x5b   :  { %2348 = vsyncadd [#allocation9], 4294966528 }
  0x5c   :  { %2349 = dma.done.wait [#allocation12], 1024  }
  0x5d   :  { %2350 = vsyncadd [#allocation12], 4294966272 }
  0x5e   :  { %2351 = dma.done.wait [#allocation15], 512  }
  0x5f   :  { %2352 = vsyncadd [#allocation15], 4294966784  ;;  %vm191_vm0 = vcmask 261120   ;;  %v2462_v0 = vld [vmem:[#allocation5] sm:$0xff]  ;;  %v2464_v1 = vld [vmem:[#allocation5 + $0x8] sm:$0xff]  ;;  %s2365_s6 = smov 96  }
  0x60   :  { %v143_v2 = vld [vmem:[#allocation2] sm:$0xff]  ;;  %v192_v3 = vsel %vm191_vm0, %v2462_v0, 0.0  ;;  %v265_v4 = vmul.f32 %v2462_v0, %v2462_v0  ;;  %v266_v5 = vmul.f32 %v2464_v1, %v2464_v1  ;;  %v159_v6 = vld [vmem:[#allocation7] sm:$0xff]  ;;  %v144_v7 = vld [vmem:[#allocation2 + $0x8] sm:$0xff]  ;;  %v195_v10 = vsel %vm191_vm0, %v2464_v1, 0.0  ;;  %s2367_s7 = smov 64  }
  0x61   :  { %193 = vadd.xlane.f32.xlu0 %v192_v3  ;;  %v160_v8 = vld [vmem:[#allocation7 + $0x8] sm:$0xff]  ;;  %v2475_v11 = vadd.f32 %v159_v6, %v143_v2  ;;  %v145_v16 = vld [vmem:[#allocation2 + $0x10] sm:$0xff]  ;;  %v161_v17 = vld [vmem:[#allocation7 + $0x10] sm:$0xff]  ;;  %vm1396_vm1 = vcmask 785920   ;;  %vm1525_vm2 = vcmask 1041409   ;;  %vm1527_vm3 = vcmask 1042434  }
  0x62   :  { %v283_v9 = vsel %vm191_vm0, %v265_v4, 0.0  ;;  %v286_v12 = vsel %vm191_vm0, %v266_v5, 0.0  ;;  %v2478_v13 = vadd.f32 %v160_v8, %v144_v7  ;;  %v146_v20 = vld [vmem:[#allocation2 + $0x18] sm:$0xff]  ;;  %v162_v21 = vld [vmem:[#allocation7 + $0x18] sm:$0xff]  ;;  %v2489_v23 = vadd.f32 %v161_v17, %v145_v16  ;;  %v147_v28 = vld [vmem:[#allocation2 + $0x20] sm:$0xff]  ;;  %s2368_s1 = smov [#allocation16]  }
  0x63   :  { %284 = vadd.xlane.f32.xlu1 %v283_v9  ;;  %v198_v14 = vsel %vm191_vm0, %v2475_v11, 0.0  ;;  %v267_v15 = vmul.f32 %v2475_v11, %v2475_v11  ;;  %v2492_v25 = vadd.f32 %v162_v21, %v146_v20  ;;  %v163_v29 = vld [vmem:[#allocation7 + $0x20] sm:$0xff]  ;;  %v148_v32 = vld [vmem:[#allocation2 + $0x28] sm:$0xff]  ;;  %v164_v33 = vld [vmem:[#allocation7 + $0x28] sm:$0xff]  ;;  %vm1529_vm4 = vcmask 1043459   ;;  %s1896_s21 = sshll.u32 %s2368_s1, 4  ;;  %s1897_s21 = int_to_ptr.vmem [resolvable:$true] %s1896_s21 }
  0x64   :  { %v201_v18 = vsel %vm191_vm0, %v2478_v13, 0.0  ;;  %v268_v19 = vmul.f32 %v2478_v13, %v2478_v13  ;;  %v204_v26 = vsel %vm191_vm0, %v2489_v23, 0.0  ;;  %v269_v27 = vmul.f32 %v2489_v23, %v2489_v23  ;;  %v149_v40 = vld [vmem:[#allocation2 + $0x30] sm:$0xff]  ;;  %v165_v41 = vld [vmem:[#allocation7 + $0x30] sm:$0xff]  ;;  %v150_v44 = vld [vmem:[#allocation2 + $0x38] sm:$0xff]  ;;  %s2323_s22 = scalar_lea.vmem %s1897_s21, 256  ;;  %p2328_p13 = scmp.lt.s32.totalorder %s1897_s21, %s1897_s21 }
  0x65   :  { %196 = vadd.xlane.f32.xlu0 %v195_v10  ;;  %v289_v22 = vsel %vm191_vm0, %v267_v15, 0.0  ;;  %v207_v30 = vsel %vm191_vm0, %v2492_v25, 0.0  ;;  %v270_v31 = vmul.f32 %v2492_v25, %v2492_v25  ;;  %v2503_v35 = vadd.f32 %v163_v29, %v147_v28  ;;  %v166_v45 = vld [vmem:[#allocation7 + $0x38] sm:$0xff]  ;;  %v151_v52 = vld [vmem:[#allocation2 + $0x40] sm:$0xff]  ;;  %v167_v53 = vld [vmem:[#allocation7 + $0x40] sm:$0xff]  ;;  %p2324_p12 = scmp.ne.s32.totalorder %s1897_s21, %s2323_s22  ;;  %p2329_p0 = scmp.lt.s32.totalorder %s2323_s22, %s2323_s22 }
  0x66   :  { %v292_v24 = vsel %vm191_vm0, %v268_v19, 0.0  ;;  %v295_v34 = vsel %vm191_vm0, %v269_v27, 0.0  ;;  %v2506_v37 = vadd.f32 %v164_v33, %v148_v32  ;;  %v2517_v47 = vadd.f32 %v165_v41, %v149_v40  ;;  %v152_v56 = vld [vmem:[#allocation2 + $0x48] sm:$0xff]  ;;  %v168_v57 = vld [vmem:[#allocation7 + $0x48] sm:$0xff]  ;;  %v153_v2 = vld [vmem:[#allocation2 + $0x50] sm:$0xff] }
  0x67   :  { %287 = vadd.xlane.f32.xlu1 %v286_v12  ;;  %v298_v36 = vsel %vm191_vm0, %v270_v31, 0.0  ;;  %v210_v38 = vsel %vm191_vm0, %v2503_v35, 0.0  ;;  %v271_v39 = vmul.f32 %v2503_v35, %v2503_v35  ;;  %v2520_v49 = vadd.f32 %v166_v45, %v150_v44  ;;  %v169_v3 = vld [vmem:[#allocation7 + $0x50] sm:$0xff]  ;;  %v171_v7 = vld [vmem:[#allocation7 + $0x60] sm:$0xff]  ;;  %v154_v10 = vld [vmem:[#allocation2 + $0x58] sm:$0xff]  ;;  %p2330_p1 = por %p2329_p0, %p2328_p13 }
  0x68   :  { %v213_v42 = vsel %vm191_vm0, %v2506_v37, 0.0  ;;  %v272_v43 = vmul.f32 %v2506_v37, %v2506_v37  ;;  %v216_v50 = vsel %vm191_vm0, %v2517_v47, 0.0  ;;  %v273_v51 = vmul.f32 %v2517_v47, %v2517_v47  ;;  %v155_v6 = vld [vmem:[#allocation2 + $0x60] sm:$0xff]  ;;  %v170_v12 = vld [vmem:[#allocation7 + $0x58] sm:$0xff]  ;;  %v172_v17 = vld [vmem:[#allocation7 + $0x68] sm:$0xff] }
  0x69   :  { %199 = vadd.xlane.f32.xlu0 %v198_v14  ;;  %v301_v46 = vsel %vm191_vm0, %v271_v39, 0.0  ;;  %v219_v54 = vsel %vm191_vm0, %v2520_v49, 0.0  ;;  %v274_v55 = vmul.f32 %v2520_v49, %v2520_v49  ;;  %v2531_v59 = vadd.f32 %v167_v53, %v151_v52  ;;  %v156_v16 = vld [vmem:[#allocation2 + $0x68] sm:$0xff]  ;;  %v173_v31 = vld [vmem:[#allocation7 + $0x70] sm:$0xff]  ;;  %p2331_p2 = pnand %p2330_p1, %p2324_p12 }
  0x6a   :  { %v304_v48 = vsel %vm191_vm0, %v272_v43, 0.0  ;;  %v307_v58 = vsel %vm191_vm0, %v273_v51, 0.0  ;;  %v2534_v61 = vadd.f32 %v168_v57, %v152_v56  ;;  %v2545_v9 = vadd.f32 %v169_v3, %v153_v2 }
  0x6b   :  { %202 = vadd.xlane.f32.xlu1 %v201_v18  ;;  %v310_v60 = vsel %vm191_vm0, %v274_v55, 0.0  ;;  %v222_v62 = vsel %vm191_vm0, %v2531_v59, 0.0  ;;  %v275_v63 = vmul.f32 %v2531_v59, %v2531_v59  ;;  %v2548_v15 = vadd.f32 %v171_v7, %v155_v6 }
  0x6c   :  { %v225_v4 = vsel %vm191_vm0, %v2534_v61, 0.0  ;;  %v276_v5 = vmul.f32 %v2534_v61, %v2534_v61  ;;  %v228_v18 = vsel %vm191_vm0, %v2545_v9, 0.0  ;;  %v2552_v19 = vadd.f32 %v170_v12, %v154_v10 }
  0x6d   :  { %290 = vadd.xlane.f32.xlu0 %v289_v22  ;;  %v313_v8 = vsel %vm191_vm0, %v275_v63, 0.0  ;;  %v234_v20 = vsel %vm191_vm0, %v2548_v15, 0.0  ;;  %v2556_v21 = vadd.f32 %v172_v17, %v156_v16  ;;  %v279_v27 = vmul.f32 %v2548_v15, %v2548_v15 }
  0x6e   :  { %v316_v14 = vsel %vm191_vm0, %v276_v5, 0.0  ;;  %v231_v22 = vsel %vm191_vm0, %v2552_v19, 0.0  ;;  %v278_v29 = vmul.f32 %v2552_v19, %v2552_v19  ;;  %v463_v5 = vlaneseq }
  0x6f   :  { %293 = vadd.xlane.f32.xlu1 %v292_v24  ;;  %v277_v24 = vmul.f32 %v2545_v9, %v2545_v9  ;;  %v325_v32 = vsel %vm191_vm0, %v279_v27, 0.0  ;;  %v280_v33 = vmul.f32 %v2556_v21, %v2556_v21  ;;  %vm1531_vm5 = vcmask 1044484  }
  0x70   :  { %v2594_v16 = vshrl.u32 %v463_v5, 7  ;;  %vm1533_vm6 = vcmask 1045509   ;;  %vm1535_vm7 = vcmask 1046534   ;;  %vm1537_vm8 = vcmask 1047559  }
  0x71   :  { %205 = vadd.xlane.f32.xlu0 %v204_v26  ;;  %v237_v26 = vsel %vm191_vm0, %v2556_v21, 0.0  ;;  %v319_v28 = vsel %vm191_vm0, %v277_v24, 0.0  ;;  %v328_v40 = vsel %vm191_vm0, %v280_v33, 0.0 }
  0x73   :  { %208 = vadd.xlane.f32.xlu1 %v207_v30  ;;  %v157_v30 = vld [vmem:[#allocation2 + $0x70] sm:$0xff] }
  0x74   :  { %v2573_v39 = vadd.f32 %v173_v31, %v157_v30  ;;  %v2603_v31 = vld [vmem:[#allocation8] sm:$0xff] }
  0x75   :  { %296 = vadd.xlane.f32.xlu0 %v295_v34  ;;  %v158_v34 = vld [vmem:[#allocation2 + $0x78] sm:$0xff] }
  0x76   :  { %v281_v43 = vmul.f32 %v2573_v39, %v2573_v39 }
  0x77   :  { %299 = vadd.xlane.f32.xlu1 %v298_v36  ;;  %v174_v36 = vld [vmem:[#allocation7 + $0x78] sm:$0xff] }
  0x78   :  { %v2576_v41 = vadd.f32 %v174_v36, %v158_v34 }
  0x79   :  { %211 = vadd.xlane.f32.xlu0 %v210_v38  ;;  %v322_v38 = vsel %vm191_vm0, %v278_v29, 0.0  ;;  %v2601_v29 = vsub.s32 0, %v2594_v16 }
  0x7a   :  { %v243_v44 = vsel %vm191_vm0, %v2576_v41, 0.0  ;;  %v282_v45 = vmul.f32 %v2576_v41, %v2576_v41 }
  0x7b   :  { %214 = vadd.xlane.f32.xlu1 %v213_v42  ;;  %v240_v42 = vsel %vm191_vm0, %v2573_v39, 0.0 }
  0x7d   :  { %302 = vadd.xlane.f32.xlu0 %v301_v46  ;;  %v331_v46 = vsel %vm191_vm0, %v281_v43, 0.0  ;;  %v2613_v43 = vrot.slane %v2603_v31, %v2601_v29 }
  0x7f   :  { %305 = vadd.xlane.f32.xlu1 %v304_v48  ;;  %v334_v48 = vsel %vm191_vm0, %v282_v45, 0.0 }
  0x81   :  { %217 = vadd.xlane.f32.xlu0 %v216_v50 }
  0x83   :  { %220 = vadd.xlane.f32.xlu1 %v219_v54 }
  0x85   :  { %308 = vadd.xlane.f32.xlu0 %v307_v58 }
  0x87   :  { %311 = vadd.xlane.f32.xlu1 %v310_v60 }
  0x89   :  { %223 = vadd.xlane.f32.xlu0 %v222_v62 }
  0x8b   :  { %226 = vadd.xlane.f32.xlu1 %v225_v4 }
  0x8d   :  { %314 = vadd.xlane.f32.xlu0 %v313_v8 }
  0x8f   :  { %317 = vadd.xlane.f32.xlu1 %v316_v14 }
  0x91   :  { %229 = vadd.xlane.f32.xlu0 %v228_v18 }
  0x93   :  { %235 = vadd.xlane.f32.xlu1 %v234_v20 }
  0x95   :  { %232 = vadd.xlane.f32.xlu0 %v231_v22 }
  0x97   :  { %238 = vadd.xlane.f32.xlu1 %v237_v26 }
  0x99   :  { %320 = vadd.xlane.f32.xlu0 %v319_v28 }
  0x9b   :  { %326 = vadd.xlane.f32.xlu1 %v325_v32 }
  0x9d   :  { %323 = vadd.xlane.f32.xlu0 %v322_v38 }
  0x9f   :  { %329 = vadd.xlane.f32.xlu1 %v328_v40  ;;  %v487_v40 = vsub.s32 1, %v2594_v16 }
  0xa1   :  { %241 = vadd.xlane.f32.xlu0 %v240_v42 }
  0xa3   :  { %244 = vadd.xlane.f32.xlu1 %v243_v44 }
  0xa5   :  { %332 = vadd.xlane.f32.xlu0 %v331_v46 }
  0xa7   :  { %335 = vadd.xlane.f32.xlu1 %v334_v48 }
  0xea   :  { %v194_v50 = vpop.xlane.xlu0 %193 }
  0xeb   :  { %v247_v51 = vmul.f32 0.03125, %v194_v50 }
  0xec   :  { %v285_v52 = vpop.xlane.xlu1 %284 }
  0xed   :  { %v355_v53 = vmul.f32 %v247_v51, %v247_v51  ;;  %v337_v54 = vmul.f32 0.03125, %v285_v52  ;;  %v391_v32 = vsub.f32 %v2462_v0, %v247_v51 }
  0xee   :  { %v197_v55 = vpop.xlane.xlu0 %196 }
  0xef   :  { %v373_v56 = vsub.f32 %v337_v54, %v355_v53  ;;  %v248_v57 = vmul.f32 0.03125, %v197_v55  ;;  %v2621_v53 = vrot.slane %v2603_v31, %v487_v40 }
  0xf0   :  { %v288_v58 = vpop.xlane.xlu1 %287 }
  0xf1   :  { %v409_v60 = vadd.f32 1e-05, %v373_v56  ;;  %v356_v62 = vmul.f32 %v248_v57, %v248_v57  ;;  %v338_v63 = vmul.f32 0.03125, %v288_v58  ;;  %v392_v51 = vsub.f32 %v2464_v1, %v248_v57 }
  0xf2   :  { %v200_v2 = vpop.xlane.xlu0 %199 }
  0xf3   :  { %2070 = vrsqrt.f32 %v409_v60  ;;  %v374_v3 = vsub.f32 %v338_v63, %v356_v62  ;;  %v2588_v4 = vmul.f32 0.03125, %v200_v2 }
  0xf4   :  { %v203_v6 = vpop.xlane.xlu1 %202 }
  0xf5   :  { %v410_v7 = vadd.f32 1e-05, %v374_v3  ;;  %v357_v8 = vmul.f32 %v2588_v4, %v2588_v4  ;;  %v2592_v10 = vmul.f32 0.03125, %v203_v6 }
  0xf6   :  { %v291_v12 = vpop.xlane.xlu0 %290 }
  0xf7   :  { %2072 = vrsqrt.f32 %v410_v7  ;;  %v339_v14 = vmul.f32 0.03125, %v291_v12  ;;  %v358_v18 = vmul.f32 %v2592_v10, %v2592_v10  ;;  %v393_v7 = vsub.f32 %v2475_v11, %v2588_v4 }
  0xf8   :  { %v294_v17 = vpop.xlane.xlu1 %293  ;;  %v394_v11 = vsub.f32 %v2478_v13, %v2592_v10 }
  0xf9   :  { %v375_v20 = vsub.f32 %v339_v14, %v357_v8  ;;  %v340_v22 = vmul.f32 0.03125, %v294_v17 }
  0xfa   :  { %v206_v24 = vpop.xlane.xlu0 %205 }
  0xfb   :  { %v411_v26 = vadd.f32 1e-05, %v375_v20  ;;  %v376_v27 = vsub.f32 %v340_v22, %v358_v18  ;;  %v2598_v28 = vmul.f32 0.03125, %v206_v24 }
  0xfc   :  { %v209_v30 = vpop.xlane.xlu1 %208 }
  0xfd   :  { %2074 = vrsqrt.f32 %v411_v26  ;;  %v412_v33 = vadd.f32 1e-05, %v376_v27  ;;  %v359_v34 = vmul.f32 %v2598_v28, %v2598_v28  ;;  %v2608_v36 = vmul.f32 0.03125, %v209_v30 }
  0xfe   :  { %v297_v38 = vpop.xlane.xlu0 %296 }
  0xff   :  { %2076 = vrsqrt.f32 %v412_v33  ;;  %v341_v42 = vmul.f32 0.03125, %v297_v38  ;;  %v360_v0 = vmul.f32 %v2608_v36, %v2608_v36 }
 0x100   :  { %v2071_v44 = vpop.eup %2070  ;;  %v300_v45 = vpop.xlane.xlu1 %299 }
 0x101   :  { %v377_v46 = vsub.f32 %v341_v42, %v359_v34  ;;  %v342_v48 = vmul.f32 0.03125, %v300_v45  ;;  %v445_v50 = vmul.f32 %v2071_v44, %v391_v32 }
 0x102   :  { %v212_v52 = vpop.xlane.xlu0 %211 }
 0x103   :  { %v413_v54 = vadd.f32 1e-05, %v377_v46  ;;  %v378_v55 = vsub.f32 %v342_v48, %v360_v0  ;;  %v2623_v56 = vmul.f32 0.03125, %v212_v52  ;;  %v467_v58 = vmul.f32 %v2613_v43, %v445_v50 }
 0x104   :  { %v2073_v60 = vpop.eup %2072  ;;  %v215_v62 = vpop.xlane.xlu1 %214 }
 0x105   :  { %2078 = vrsqrt.f32 %v413_v54  ;;  %v414_v63 = vadd.f32 1e-05, %v378_v55  ;;  %v361_v2 = vmul.f32 %v2623_v56, %v2623_v56  ;;  %v2628_v1 = vmul.f32 0.03125, %v215_v62 }
 0x106   :  { %v303_v57 = vpop.xlane.xlu0 %302  ;;  %v2631_v3 = vadd.f32 %v2621_v53, %v467_v58  ;;  %v446_v5 = vmul.f32 %v2073_v60, %v392_v51  ;;  %v395_v51 = vsub.f32 %v2489_v23, %v2598_v28 }
 0x107   :  { %2080 = vrsqrt.f32 %v414_v63  ;;  %v343_v6 = vmul.f32 0.03125, %v303_v57  ;;  %v362_v17 = vmul.f32 %v2628_v1, %v2628_v1 }
 0x108   :  { %v306_v8 = vpop.xlane.xlu1 %305  ;;  %v507_v12 = vsel %vm191_vm0, %v2631_v3, 0.0  ;;  %v468_v14 = vmul.f32 %v2613_v43, %v446_v5  ;;  %v579_v22 = vmul.f32 %v2631_v3, %v2631_v3 }
 0x109   :  { %v379_v18 = vsub.f32 %v343_v6, %v361_v2  ;;  %v344_v20 = vmul.f32 0.03125, %v306_v8  ;;  %508 = vadd.xlane.f32.xlu0 %v507_v12 }
 0x10a   :  { %v2075_v24 = vpop.eup %2074  ;;  %v218_v26 = vpop.xlane.xlu0 %217  ;;  %v2643_v27 = vadd.f32 %v2621_v53, %v468_v14  ;;  %v597_v42 = vsel %vm191_vm0, %v579_v22, 0.0 }
 0x10b   :  { %v415_v4 = vadd.f32 1e-05, %v379_v18  ;;  %v380_v30 = vsub.f32 %v344_v20, %v362_v17  ;;  %v2647_v32 = vmul.f32 0.03125, %v218_v26  ;;  %v447_v45 = vmul.f32 %v2075_v24, %v393_v7 }
 0x10c   :  { %v2077_v33 = vpop.eup %2076  ;;  %v221_v34 = vpop.xlane.xlu1 %220  ;;  %v510_v38 = vsel %vm191_vm0, %v2643_v27, 0.0  ;;  %v580_v44 = vmul.f32 %v2643_v27, %v2643_v27  ;;  %v396_v17 = vsub.f32 %v2492_v25, %v2608_v36 }
 0x10d   :  { %2082 = vrsqrt.f32 %v415_v4  ;;  %v416_v0 = vadd.f32 1e-05, %v380_v30  ;;  %v363_v13 = vmul.f32 %v2647_v32, %v2647_v32  ;;  %511 = vadd.xlane.f32.xlu1 %v510_v38  ;;  %598 = vadd.xlane.f32.xlu0 %v597_v42  ;;  %v2656_v10 = vmul.f32 0.03125, %v221_v34 }
 0x10e   :  { %v309_v46 = vpop.xlane.xlu0 %308  ;;  %v469_v48 = vmul.f32 %v2613_v43, %v447_v45  ;;  %v448_v50 = vmul.f32 %v2077_v33, %v394_v11  ;;  %v600_v55 = vsel %vm191_vm0, %v580_v44, 0.0  ;;  %v397_v33 = vsub.f32 %v2503_v35, %v2623_v56 }
 0x10f   :  { %2084 = vrsqrt.f32 %v416_v0  ;;  %v345_v52 = vmul.f32 0.03125, %v309_v46  ;;  %v364_v62 = vmul.f32 %v2656_v10, %v2656_v10 }
 0x110   :  { %v312_v54 = vpop.xlane.xlu1 %311  ;;  %v2663_v58 = vadd.f32 %v2621_v53, %v469_v48  ;;  %v470_v60 = vmul.f32 %v2613_v43, %v448_v50 }
 0x111   :  { %v381_v63 = vsub.f32 %v345_v52, %v363_v13  ;;  %v346_v2 = vmul.f32 0.03125, %v312_v54  ;;  %601 = vadd.xlane.f32.xlu1 %v600_v55  ;;  %v398_v52 = vsub.f32 %v2506_v37, %v2628_v1 }
 0x112   :  { %v2079_v57 = vpop.eup %2078  ;;  %v224_v5 = vpop.xlane.xlu0 %223  ;;  %v513_v23 = vsel %vm191_vm0, %v2663_v58, 0.0  ;;  %v2671_v28 = vadd.f32 %v2621_v53, %v470_v60 }
 0x113   :  { %v417_v6 = vadd.f32 1e-05, %v381_v63  ;;  %v382_v7 = vsub.f32 %v346_v2, %v364_v62  ;;  %v2673_v8 = vmul.f32 0.03125, %v224_v5  ;;  %514 = vadd.xlane.f32.xlu0 %v513_v23  ;;  %v449_v12 = vmul.f32 %v2079_v57, %v395_v51 }
 0x114   :  { %v2081_v14 = vpop.eup %2080  ;;  %v227_v18 = vpop.xlane.xlu1 %226  ;;  %v516_v20 = vsel %vm191_vm0, %v2671_v28, 0.0  ;;  %v399_v5 = vsub.f32 %v2517_v47, %v2647_v32  ;;  %v400_v32 = vsub.f32 %v2520_v49, %v2656_v10 }
 0x115   :  { %2086 = vrsqrt.f32 %v417_v6  ;;  %v418_v22 = vadd.f32 1e-05, %v382_v7  ;;  %v365_v24 = vmul.f32 %v2673_v8, %v2673_v8  ;;  %517 = vadd.xlane.f32.xlu1 %v516_v20  ;;  %v2681_v26 = vmul.f32 0.03125, %v227_v18 }
 0x116   :  { %v315_v11 = vpop.xlane.xlu0 %314  ;;  %v471_v4 = vmul.f32 %v2613_v43, %v449_v12  ;;  %v450_v30 = vmul.f32 %v2081_v14, %v396_v17 }
 0x117   :  { %2088 = vrsqrt.f32 %v418_v22  ;;  %v347_v25 = vmul.f32 0.03125, %v315_v11  ;;  %v366_v42 = vmul.f32 %v2681_v26, %v2681_v26 }
 0x118   :  { %v318_v36 = vpop.xlane.xlu1 %317  ;;  %v2687_v34 = vadd.f32 %v2621_v53, %v471_v4  ;;  %v472_v38 = vmul.f32 %v2613_v43, %v450_v30 }
 0x119   :  { %v383_v44 = vsub.f32 %v347_v25, %v365_v24  ;;  %v348_v45 = vmul.f32 0.03125, %v318_v36 }
 0x11a   :  { %v2083_v0 = vpop.eup %2082  ;;  %v230_v13 = vpop.xlane.xlu0 %229  ;;  %v519_v46 = vsel %vm191_vm0, %v2687_v34, 0.0  ;;  %v2695_v35 = vadd.f32 %v2621_v53, %v472_v38 }
 0x11b   :  { %v419_v56 = vadd.f32 1e-05, %v383_v44  ;;  %v384_v48 = vsub.f32 %v348_v45, %v366_v42  ;;  %520 = vadd.xlane.f32.xlu0 %v519_v46  ;;  %v451_v50 = vmul.f32 %v2083_v0, %v397_v33  ;;  %v2701_v62 = vmul.f32 0.03125, %v230_v13 }
 0x11c   :  { %v2085_v51 = vpop.eup %2084  ;;  %v236_v54 = vpop.xlane.xlu1 %235  ;;  %v522_v55 = vsel %vm191_vm0, %v2695_v35, 0.0  ;;  %v401_v46 = vsub.f32 %v2531_v59, %v2673_v8 }
 0x11d   :  { %2090 = vrsqrt.f32 %v419_v56  ;;  %v420_v60 = vadd.f32 1e-05, %v384_v48  ;;  %523 = vadd.xlane.f32.xlu1 %v522_v55  ;;  %v473_v2 = vmul.f32 %v2613_v43, %v451_v50  ;;  %v452_v57 = vmul.f32 %v2085_v51, %v398_v52 }
 0x11e   :  { %v233_v63 = vpop.xlane.xlu0 %232  ;;  %v2706_v23 = vmul.f32 0.03125, %v236_v54  ;;  %v367_v12 = vmul.f32 %v2701_v62, %v2701_v62 }
 0x11f   :  { %2092 = vrsqrt.f32 %v420_v60  ;;  %v2708_v37 = vmul.f32 0.03125, %v233_v63  ;;  %v2711_v6 = vadd.f32 %v2621_v53, %v473_v2  ;;  %v474_v7 = vmul.f32 %v2613_v43, %v452_v57 }
 0x120   :  { %v239_v1 = vpop.xlane.xlu1 %238  ;;  %v369_v11 = vmul.f32 %v2706_v23, %v2706_v23 }
 0x121   :  { %v525_v18 = vsel %vm191_vm0, %v2711_v6, 0.0  ;;  %v2719_v47 = vadd.f32 %v2621_v53, %v474_v7  ;;  %v368_v4 = vmul.f32 %v2708_v37, %v2708_v37  ;;  %v2727_v30 = vmul.f32 0.03125, %v239_v1 }
 0x122   :  { %v2087_v14 = vpop.eup %2086  ;;  %v321_v17 = vpop.xlane.xlu0 %320  ;;  %526 = vadd.xlane.f32.xlu0 %v525_v18  ;;  %v402_v1 = vsub.f32 %v2534_v61, %v2681_v26  ;;  %v823_v26 = vld [vmem:[#allocation10 + $0x10] sm:$0xff] }
 0x123   :  { %v349_v20 = vmul.f32 0.03125, %v321_v17  ;;  %v453_v22 = vmul.f32 %v2087_v14, %v399_v5  ;;  %v528_v25 = vsel %vm191_vm0, %v2719_v47, 0.0  ;;  %v370_v56 = vmul.f32 %v2727_v30, %v2727_v30 }
 0x124   :  { %v2089_v24 = vpop.eup %2088  ;;  %v327_v33 = vpop.xlane.xlu1 %326  ;;  %529 = vadd.xlane.f32.xlu1 %v528_v25 }
 0x125   :  { %v385_v36 = vsub.f32 %v349_v20, %v367_v12  ;;  %v351_v38 = vmul.f32 0.03125, %v327_v33  ;;  %v475_v49 = vmul.f32 %v2613_v43, %v453_v22  ;;  %v454_v10 = vmul.f32 %v2089_v24, %v400_v32  ;;  %v824_v32 = vld [vmem:[#allocation10 + $0x18] sm:$0xff] }
 0x126   :  { %v324_v42 = vpop.xlane.xlu0 %323  ;;  %1980 = vmatprep.subr.mxu0 %v824_v32  ;;  %2048 = vmatprep.subr.mxu1 %v824_v32 }
 0x127   :  { %v421_v44 = vadd.f32 1e-05, %v385_v36  ;;  %v387_v45 = vsub.f32 %v351_v38, %v369_v11  ;;  %v350_v0 = vmul.f32 0.03125, %v324_v42  ;;  %v2733_v13 = vadd.f32 %v2621_v53, %v475_v49  ;;  %1981 = vmatpush3.msra.mxu0 %v824_v32  ;;  %2052 = vmatpush3.msra.mxu1 %v824_v32  ;;  %v821_v42 = vld [vmem:[#allocation10] sm:$0xff] }
 0x128   :  { %v330_v48 = vpop.xlane.xlu1 %329  ;;  %v476_v50 = vmul.f32 %v2613_v43, %v454_v10  ;;  %1982 = vmatprep.subr.mxu0 %v823_v26  ;;  %v822_v10 = vld [vmem:[#allocation10 + $0x8] sm:$0xff]  ;;  %2049 = vmatprep.subr.mxu1 %v823_v26 }
 0x129   :  { %2094 = vrsqrt.f32 %v421_v44  ;;  %v423_v51 = vadd.f32 1e-05, %v387_v45  ;;  %v386_v52 = vsub.f32 %v350_v0, %v368_v4  ;;  %v352_v54 = vmul.f32 0.03125, %v330_v48  ;;  %1983 = vmatpush3.msra.mxu0 %v823_v26  ;;  %2053 = vmatpush3.msra.mxu1 %v823_v26 }
 0x12a   :  { %v2091_v55 = vpop.eup %2090  ;;  %v242_v60 = vpop.xlane.xlu0 %241  ;;  %v531_v63 = vsel %vm191_vm0, %v2733_v13, 0.0  ;;  %v2743_v2 = vadd.f32 %v2621_v53, %v476_v50  ;;  %1984 = vmatprep.subr.mxu0 %v822_v10  ;;  %2050 = vmatprep.subr.mxu1 %v822_v10  ;;  %v403_v48 = vsub.f32 %v2545_v9, %v2701_v62 }
 0x12b   :  { %2096 = vrsqrt.f32 %v423_v51  ;;  %v422_v59 = vadd.f32 1e-05, %v386_v52  ;;  %v388_v8 = vsub.f32 %v352_v54, %v370_v56  ;;  %v2745_v57 = vmul.f32 0.03125, %v242_v60  ;;  %532 = vadd.xlane.f32.xlu0 %v531_v63  ;;  %1985 = vmatpush3.msra.mxu0 %v822_v10 }
 0x12c   :  { %v2093_v5 = vpop.eup %2092  ;;  %v245_v7 = vpop.xlane.xlu1 %244  ;;  %v534_v12 = vsel %vm191_vm0, %v2743_v2, 0.0  ;;  %v455_v14 = vmul.f32 %v2091_v55, %v401_v46  ;;  %1986 = vmatprep.subr.mxu0 %v821_v42  ;;  %2054 = vmatpush3.msra.mxu1 %v822_v10  ;;  %v405_v52 = vsub.f32 %v2548_v15, %v2706_v23  ;;  %v404_v60 = vsub.f32 %v2552_v19, %v2708_v37 }
 0x12d   :  { %2098 = vrsqrt.f32 %v422_v59  ;;  %v424_v17 = vadd.f32 1e-05, %v388_v8  ;;  %v371_v18 = vmul.f32 %v2745_v57, %v2745_v57  ;;  %535 = vadd.xlane.f32.xlu1 %v534_v12  ;;  %v2753_v20 = vmul.f32 0.03125, %v245_v7  ;;  %1987 = vmatpush3.msra.mxu0 %v821_v42 }
 0x12e   :  { %v333_v22 = vpop.xlane.xlu0 %332  ;;  %v477_v24 = vmul.f32 %v2613_v43, %v455_v14  ;;  %v456_v11 = vmul.f32 %v2093_v5, %v402_v1  ;;  %2051 = vmatprep.subr.mxu1 %v821_v42  ;;  %v406_v59 = vsub.f32 %v2556_v21, %v2727_v30  ;;  %v407_v21 = vsub.f32 %v2573_v39, %v2745_v57 }
 0x12f   :  { %2100 = vrsqrt.f32 %v424_v17  ;;  %v353_v61 = vmul.f32 0.03125, %v333_v22  ;;  %v372_v36 = vmul.f32 %v2753_v20, %v2753_v20  ;;  %2055 = vmatpush3.msra.mxu1 %v821_v42  ;;  %v408_v39 = vsub.f32 %v2576_v41, %v2753_v20 }
 0x130   :  { %v336_v4 = vpop.xlane.xlu1 %335  ;;  %v2757_v33 = vadd.f32 %v2621_v53, %v477_v24  ;;  %v478_v25 = vmul.f32 %v2613_v43, %v456_v11  ;;  %v581_v41 = vmul.f32 %v2663_v58, %v2663_v58  ;;  %v584_v10 = vmul.f32 %v2695_v35, %v2695_v35 }
 0x131   :  { %v389_v38 = vsub.f32 %v353_v61, %v371_v18  ;;  %v354_v49 = vmul.f32 0.03125, %v336_v4 }
 0x132   :  { %v537_v44 = vsel %vm191_vm0, %v2757_v33, 0.0  ;;  %v2765_v45 = vadd.f32 %v2621_v53, %v478_v25 }
 0x133   :  { %v425_v0 = vadd.f32 1e-05, %v389_v38  ;;  %v390_v46 = vsub.f32 %v354_v49, %v372_v36  ;;  %538 = vadd.xlane.f32.xlu0 %v537_v44  ;;  %v582_v38 = vmul.f32 %v2671_v28, %v2671_v28  ;;  %v603_v49 = vsel %vm191_vm0, %v581_v41, 0.0 }
 0x134   :  { %v540_v56 = vsel %vm191_vm0, %v2765_v45, 0.0  ;;  %v585_v44 = vmul.f32 %v2711_v6, %v2711_v6 }
 0x135   :  { %2102 = vrsqrt.f32 %v425_v0  ;;  %v426_v50 = vadd.f32 1e-05, %v390_v46  ;;  %541 = vadd.xlane.f32.xlu1 %v540_v56  ;;  %v612_v0 = vsel %vm191_vm0, %v584_v10, 0.0  ;;  %v586_v46 = vmul.f32 %v2719_v47, %v2719_v47 }
 0x136   :  { %v2095_v51 = vpop.eup %2094  ;;  %v615_v56 = vsel %vm191_vm0, %v585_v44, 0.0  ;;  %v801_v10 = vsub.s32 3, %v2594_v16 }
 0x137   :  { %2104 = vrsqrt.f32 %v426_v50  ;;  %v457_v54 = vmul.f32 %v2095_v51, %v403_v48  ;;  %v587_v48 = vmul.f32 %v2733_v13, %v2733_v13  ;;  %v618_v50 = vsel %vm191_vm0, %v586_v46, 0.0 }
 0x138   :  { %v2097_v55 = vpop.eup %2096  ;;  %v588_v51 = vmul.f32 %v2743_v2, %v2743_v2 }
 0x139   :  { %v479_v63 = vmul.f32 %v2613_v43, %v457_v54  ;;  %v459_v9 = vmul.f32 %v2097_v55, %v405_v52  ;;  %v621_v52 = vsel %vm191_vm0, %v587_v48, 0.0  ;;  %v589_v54 = vmul.f32 %v2757_v33, %v2757_v33 }
 0x13a   :  { %v2099_v62 = vpop.eup %2098  ;;  %v624_v55 = vsel %vm191_vm0, %v588_v51, 0.0 }
 0x13b   :  { %v2779_v8 = vadd.f32 %v2621_v53, %v479_v63  ;;  %v481_v15 = vmul.f32 %v2613_v43, %v459_v9  ;;  %v458_v23 = vmul.f32 %v2099_v62, %v404_v60  ;;  %v590_v60 = vmul.f32 %v2765_v45, %v2765_v45 }
 0x13c   :  { %v2101_v5 = vpop.eup %2100  ;;  %v627_v63 = vsel %vm191_vm0, %v589_v54, 0.0 }
 0x13d   :  { %v543_v1 = vsel %vm191_vm0, %v2779_v8, 0.0  ;;  %v2785_v7 = vadd.f32 %v2621_v53, %v481_v15  ;;  %v480_v19 = vmul.f32 %v2613_v43, %v458_v23  ;;  %v460_v37 = vmul.f32 %v2101_v5, %v406_v59 }
 0x13e   :  { %544 = vadd.xlane.f32.xlu0 %v543_v1  ;;  %v591_v9 = vmul.f32 %v2779_v8, %v2779_v8  ;;  %v630_v62 = vsel %vm191_vm0, %v590_v60, 0.0 }
 0x13f   :  { %v549_v30 = vsel %vm191_vm0, %v2785_v7, 0.0  ;;  %v2793_v12 = vadd.f32 %v2621_v53, %v480_v19  ;;  %v482_v14 = vmul.f32 %v2613_v43, %v460_v37  ;;  %v593_v59 = vmul.f32 %v2785_v7, %v2785_v7 }
 0x140   :  { %550 = vadd.xlane.f32.xlu1 %v549_v30  ;;  %v633_v15 = vsel %vm191_vm0, %v591_v9, 0.0 }
 0x141   :  { %v546_v17 = vsel %vm191_vm0, %v2793_v12, 0.0  ;;  %v2799_v18 = vadd.f32 %v2621_v53, %v482_v14  ;;  %v592_v23 = vmul.f32 %v2793_v12, %v2793_v12  ;;  %v639_v5 = vsel %vm191_vm0, %v593_v59, 0.0 }
 0x142   :  { %v2103_v32 = vpop.eup %2102  ;;  %547 = vadd.xlane.f32.xlu0 %v546_v17 }
 0x143   :  { %v552_v57 = vsel %vm191_vm0, %v2799_v18, 0.0  ;;  %v461_v22 = vmul.f32 %v2103_v32, %v407_v21  ;;  %v594_v1 = vmul.f32 %v2799_v18, %v2799_v18  ;;  %v636_v19 = vsel %vm191_vm0, %v592_v23, 0.0 }
 0x144   :  { %v2105_v24 = vpop.eup %2104  ;;  %553 = vadd.xlane.f32.xlu1 %v552_v57 }
 0x145   :  { %v483_v11 = vmul.f32 %v2613_v43, %v461_v22  ;;  %v462_v61 = vmul.f32 %v2105_v24, %v408_v39  ;;  %v642_v21 = vsel %vm191_vm0, %v594_v1, 0.0 }
 0x147   :  { %v2807_v26 = vadd.f32 %v2621_v53, %v483_v11  ;;  %v484_v4 = vmul.f32 %v2613_v43, %v462_v61  ;;  %v583_v43 = vmul.f32 %v2687_v34, %v2687_v34 }
 0x149   :  { %v555_v25 = vsel %vm191_vm0, %v2807_v26, 0.0  ;;  %v2813_v36 = vadd.f32 %v2621_v53, %v484_v4  ;;  %v606_v53 = vsel %vm191_vm0, %v582_v38, 0.0  ;;  %v609_v42 = vsel %vm191_vm0, %v583_v43, 0.0 }
 0x14a   :  { %556 = vadd.xlane.f32.xlu0 %v555_v25  ;;  %v595_v37 = vmul.f32 %v2807_v26, %v2807_v26 }
 0x14b   :  { %v558_v20 = vsel %vm191_vm0, %v2813_v36, 0.0  ;;  %v596_v30 = vmul.f32 %v2813_v36, %v2813_v36 }
 0x14c   :  { %559 = vadd.xlane.f32.xlu1 %v558_v20  ;;  %v645_v14 = vsel %vm191_vm0, %v595_v37, 0.0 }
 0x14d   :  { %v648_v17 = vsel %vm191_vm0, %v596_v30, 0.0 }
 0x14e   :  { %604 = vadd.xlane.f32.xlu0 %v603_v49 }
 0x150   :  { %607 = vadd.xlane.f32.xlu1 %v606_v53  ;;  %v779_v53 = vsub.s32 2, %v2594_v16 }
 0x152   :  { %610 = vadd.xlane.f32.xlu0 %v609_v42  ;;  %v2869_v44 = vrot.slane %v2603_v31, %v779_v53 }
 0x154   :  { %613 = vadd.xlane.f32.xlu1 %v612_v0 }
 0x156   :  { %616 = vadd.xlane.f32.xlu0 %v615_v56  ;;  %v2872_v56 = vrot.slane %v2603_v31, %v801_v10 }
 0x158   :  { %619 = vadd.xlane.f32.xlu1 %v618_v50 }
 0x15a   :  { %622 = vadd.xlane.f32.xlu0 %v621_v52 }
 0x15c   :  { %625 = vadd.xlane.f32.xlu1 %v624_v55 }
 0x15e   :  { %628 = vadd.xlane.f32.xlu0 %v627_v63 }
 0x160   :  { %631 = vadd.xlane.f32.xlu1 %v630_v62 }
 0x162   :  { %634 = vadd.xlane.f32.xlu0 %v633_v15 }
 0x164   :  { %640 = vadd.xlane.f32.xlu1 %v639_v5 }
 0x166   :  { %637 = vadd.xlane.f32.xlu0 %v636_v19 }
 0x168   :  { %643 = vadd.xlane.f32.xlu1 %v642_v21 }
 0x16a   :  { %646 = vadd.xlane.f32.xlu0 %v645_v14 }
 0x16c   :  { %649 = vadd.xlane.f32.xlu1 %v648_v17 }
 0x192   :  { %v509_v32 = vpop.xlane.xlu0 %508 }
 0x193   :  { %v561_v39 = vmul.f32 0.03125, %v509_v32 }
 0x195   :  { %v669_v24 = vmul.f32 %v561_v39, %v561_v39  ;;  %v705_v42 = vsub.f32 %v2631_v3, %v561_v39 }
 0x196   :  { %v512_v57 = vpop.xlane.xlu1 %511  ;;  %v599_v22 = vpop.xlane.xlu0 %598 }
 0x197   :  { %v562_v11 = vmul.f32 0.03125, %v512_v57  ;;  %v651_v61 = vmul.f32 0.03125, %v599_v22 }
 0x199   :  { %v687_v4 = vsub.f32 %v651_v61, %v669_v24  ;;  %v670_v41 = vmul.f32 %v562_v11, %v562_v11  ;;  %v706_v51 = vsub.f32 %v2643_v27, %v562_v11 }
 0x19a   :  { %v602_v25 = vpop.xlane.xlu1 %601 }
 0x19b   :  { %v723_v20 = vadd.f32 1e-05, %v687_v4  ;;  %v652_v38 = vmul.f32 0.03125, %v602_v25 }
 0x19c   :  { %v515_v60 = vpop.xlane.xlu0 %514 }
 0x19d   :  { %2106 = vrsqrt.f32 %v723_v20  ;;  %v688_v49 = vsub.f32 %v652_v38, %v670_v41  ;;  %v2889_v14 = vmul.f32 0.03125, %v515_v60 }
 0x19e   :  { %v518_v63 = vpop.xlane.xlu1 %517 }
 0x19f   :  { %v724_v43 = vadd.f32 1e-05, %v688_v49  ;;  %v2893_v32 = vmul.f32 0.03125, %v518_v63  ;;  %v671_v57 = vmul.f32 %v2889_v14, %v2889_v14 }
 0x1a1   :  { %2108 = vrsqrt.f32 %v724_v43  ;;  %v672_v4 = vmul.f32 %v2893_v32, %v2893_v32 }
 0x1a4   :  { %v521_v31 = vpop.xlane.xlu0 %520 }
 0x1a5   :  { %v2897_v22 = vmul.f32 0.03125, %v521_v31 }
 0x1a6   :  { %v524_v9 = vpop.xlane.xlu1 %523 }
 0x1a7   :  { %v2899_v11 = vmul.f32 0.03125, %v524_v9  ;;  %v673_v49 = vmul.f32 %v2897_v22, %v2897_v22 }
 0x1aa   :  { %v2107_v0 = vpop.eup %2106 }
 0x1ab   :  { %v759_v46 = vmul.f32 %v2107_v0, %v705_v42  ;;  %v527_v62 = vpop.xlane.xlu0 %526  ;;  %v674_v42 = vmul.f32 %v2899_v11, %v2899_v11 }
 0x1ac   :  { %v2903_v20 = vmul.f32 0.03125, %v527_v62 }
 0x1ad   :  { %v781_v48 = vmul.f32 %v2869_v44, %v759_v46  ;;  %v530_v59 = vpop.xlane.xlu1 %529 }
 0x1ae   :  { %v2109_v50 = vpop.eup %2108  ;;  %v2909_v0 = vmul.f32 0.03125, %v530_v59 }
 0x1af   :  { %v803_v52 = vadd.f32 %v2872_v56, %v781_v48  ;;  %v760_v54 = vmul.f32 %v2109_v50, %v706_v51 }
 0x1b0   :  { %v676_v31 = vmul.f32 %v2909_v0, %v2909_v0 }
 0x1b1   :  { %1988 = vmatprep.mubr.msk.f32.mxu0 %vm191_vm0, %v803_v52  ;;  %v782_v3 = vmul.f32 %v2869_v44, %v760_v54  ;;  %v675_v52 = vmul.f32 %v2903_v20, %v2903_v20 }
 0x1b3   :  { %v804_v55 = vadd.f32 %v2872_v56, %v782_v3 }
 0x1b4   :  { %v533_v15 = vpop.xlane.xlu0 %532 }
 0x1b5   :  { %1989 = vmatmul.mubr.msk.f32.vlgmr.msra.gmra.mxu0 %vm191_vm0, %v804_v55  ;;  %v2913_v54 = vmul.f32 0.03125, %v533_v15 }
 0x1b6   :  { %v536_v23 = vpop.xlane.xlu1 %535 }
 0x1b7   :  { %v2917_v9 = vmul.f32 0.03125, %v536_v23 }
 0x1b9   :  { %v678_v23 = vmul.f32 %v2917_v9, %v2917_v9 }
 0x1bc   :  { %v539_v27 = vpop.xlane.xlu0 %538 }
 0x1bd   :  { %v2921_v15 = vmul.f32 0.03125, %v539_v27  ;;  %v708_v27 = vsub.f32 %v2671_v28, %v2893_v32 }
 0x1be   :  { %v542_v5 = vpop.xlane.xlu1 %541 }
 0x1c7   :  { %v545_v1 = vpop.xlane.xlu0 %544 }
 0x1c9   :  { %v2881_v19 = vpop.xlane.xlu1 %550 }
 0x1ca   :  { %v2942_v28 = vmul.f32 0.03125, %v2881_v19 }
 0x1cb   :  { %v2883_v37 = vpop.xlane.xlu0 %547 }
 0x1cd   :  { %v2885_v21 = vpop.xlane.xlu1 %553 }
 0x1ce   :  { %v2954_v19 = vmul.f32 0.03125, %v2885_v21 }
 0x1d3   :  { %v2887_v30 = vpop.xlane.xlu0 %556 }
 0x1d5   :  { %v2891_v17 = vpop.xlane.xlu1 %559 }
 0x1d7   :  { %v605_v39 = vpop.xlane.xlu0 %604 }
 0x1d8   :  { %v653_v24 = vmul.f32 0.03125, %v605_v39 }
 0x1d9   :  { %v608_v61 = vpop.xlane.xlu1 %607 }
 0x1da   :  { %v689_v25 = vsub.f32 %v653_v24, %v671_v57  ;;  %v654_v41 = vmul.f32 0.03125, %v608_v61  ;;  %v677_v24 = vmul.f32 %v2913_v54, %v2913_v54 }
 0x1db   :  { %v611_v38 = vpop.xlane.xlu0 %610 }
 0x1dc   :  { %v725_v43 = vadd.f32 1e-05, %v689_v25  ;;  %v690_v53 = vsub.f32 %v654_v41, %v672_v4  ;;  %v655_v10 = vmul.f32 0.03125, %v611_v38  ;;  %v707_v38 = vsub.f32 %v2663_v58, %v2889_v14 }
 0x1dd   :  { %v614_v46 = vpop.xlane.xlu1 %613  ;;  %v2935_v58 = vmul.f32 0.03125, %v545_v1 }
 0x1de   :  { %2110 = vrsqrt.f32 %v725_v43  ;;  %v726_v48 = vadd.f32 1e-05, %v690_v53  ;;  %v691_v50 = vsub.f32 %v655_v10, %v673_v49  ;;  %v656_v51 = vmul.f32 0.03125, %v614_v46 }
 0x1df   :  { %v617_v3 = vpop.xlane.xlu0 %616  ;;  %v2927_v49 = vmul.f32 0.03125, %v542_v5  ;;  %v709_v46 = vsub.f32 %v2687_v34, %v2897_v22  ;;  %v2945_v34 = vmul.f32 0.03125, %v2883_v37 }
 0x1e0   :  { %2112 = vrsqrt.f32 %v726_v48  ;;  %v727_v55 = vadd.f32 1e-05, %v691_v50  ;;  %v692_v60 = vsub.f32 %v656_v51, %v674_v42  ;;  %v657_v63 = vmul.f32 0.03125, %v617_v3 }
 0x1e1   :  { %v620_v62 = vpop.xlane.xlu1 %619  ;;  %v679_v48 = vmul.f32 %v2921_v15, %v2921_v15  ;;  %v680_v3 = vmul.f32 %v2927_v49, %v2927_v49 }
 0x1e2   :  { %2114 = vrsqrt.f32 %v727_v55  ;;  %v728_v59 = vadd.f32 1e-05, %v692_v60  ;;  %v693_v39 = vsub.f32 %v657_v63, %v675_v52  ;;  %v658_v57 = vmul.f32 0.03125, %v620_v62 }
 0x1e3   :  { %v623_v61 = vpop.xlane.xlu0 %622  ;;  %v710_v52 = vsub.f32 %v2695_v35, %v2899_v11  ;;  %v711_v63 = vsub.f32 %v2711_v6, %v2903_v20  ;;  %v712_v35 = vsub.f32 %v2719_v47, %v2909_v0  ;;  %v681_v11 = vmul.f32 %v2935_v58, %v2935_v58 }
 0x1e4   :  { %2116 = vrsqrt.f32 %v728_v59  ;;  %v729_v4 = vadd.f32 1e-05, %v693_v39  ;;  %v694_v25 = vsub.f32 %v658_v57, %v676_v31  ;;  %v659_v41 = vmul.f32 0.03125, %v623_v61 }
 0x1e5   :  { %v626_v43 = vpop.xlane.xlu1 %625  ;;  %v713_v57 = vsub.f32 %v2733_v13, %v2913_v54  ;;  %v683_v6 = vmul.f32 %v2942_v28, %v2942_v28  ;;  %v682_v20 = vmul.f32 %v2945_v34, %v2945_v34 }
 0x1e6   :  { %2118 = vrsqrt.f32 %v729_v4  ;;  %v730_v53 = vadd.f32 1e-05, %v694_v25  ;;  %v695_v10 = vsub.f32 %v659_v41, %v677_v24  ;;  %v660_v42 = vmul.f32 0.03125, %v626_v43 }
 0x1e7   :  { %v629_v14 = vpop.xlane.xlu0 %628  ;;  %v2965_v43 = vmul.f32 0.03125, %v2887_v30 }
 0x1e8   :  { %2120 = vrsqrt.f32 %v730_v53  ;;  %v731_v5 = vadd.f32 1e-05, %v695_v10  ;;  %v696_v50 = vsub.f32 %v660_v42, %v678_v23  ;;  %v661_v51 = vmul.f32 0.03125, %v629_v14 }
 0x1e9   :  { %v632_v32 = vpop.xlane.xlu1 %631  ;;  %v684_v23 = vmul.f32 %v2954_v19, %v2954_v19  ;;  %v2969_v14 = vmul.f32 0.03125, %v2891_v17 }
 0x1ea   :  { %2122 = vrsqrt.f32 %v731_v5  ;;  %v732_v1 = vadd.f32 1e-05, %v696_v50  ;;  %v697_v22 = vsub.f32 %v661_v51, %v679_v48  ;;  %v662_v55 = vmul.f32 0.03125, %v632_v32 }
 0x1eb   :  { %v2111_v60 = vpop.eup %2110  ;;  %v635_v37 = vpop.xlane.xlu0 %634 }
 0x1ec   :  { %2124 = vrsqrt.f32 %v732_v1  ;;  %v733_v31 = vadd.f32 1e-05, %v697_v22  ;;  %v698_v62 = vsub.f32 %v662_v55, %v680_v3  ;;  %v663_v59 = vmul.f32 0.03125, %v635_v37 }
 0x1ed   :  { %v2113_v39 = vpop.eup %2112  ;;  %v641_v24 = vpop.xlane.xlu1 %640  ;;  %v761_v61 = vmul.f32 %v2111_v60, %v707_v38 }
 0x1ee   :  { %2126 = vrsqrt.f32 %v733_v31  ;;  %v734_v21 = vadd.f32 1e-05, %v698_v62  ;;  %v699_v4 = vsub.f32 %v663_v59, %v681_v11  ;;  %v665_v25 = vmul.f32 0.03125, %v641_v24 }
 0x1ef   :  { %v2115_v41 = vpop.eup %2114  ;;  %v638_v13 = vpop.xlane.xlu0 %637  ;;  %v783_v54 = vmul.f32 %v2869_v44, %v761_v61  ;;  %v762_v53 = vmul.f32 %v2113_v39, %v708_v27  ;;  %v685_v27 = vmul.f32 %v2965_v43, %v2965_v43  ;;  %v686_v59 = vmul.f32 %v2969_v14, %v2969_v14 }
 0x1f0   :  { %2128 = vrsqrt.f32 %v734_v21  ;;  %v735_v10 = vadd.f32 1e-05, %v699_v4  ;;  %v701_v42 = vsub.f32 %v665_v25, %v683_v6  ;;  %v664_v48 = vmul.f32 0.03125, %v638_v13 }
 0x1f1   :  { %v2117_v38 = vpop.eup %2116  ;;  %v644_v5 = vpop.xlane.xlu1 %643  ;;  %v805_v50 = vadd.f32 %v2872_v56, %v783_v54  ;;  %v784_v51 = vmul.f32 %v2869_v44, %v762_v53  ;;  %v763_v3 = vmul.f32 %v2115_v41, %v709_v46  ;;  %v714_v25 = vsub.f32 %v2743_v2, %v2917_v9 }
 0x1f2   :  { %2130 = vrsqrt.f32 %v735_v10  ;;  %v737_v30 = vadd.f32 1e-05, %v701_v42  ;;  %v700_v32 = vsub.f32 %v664_v48, %v682_v20  ;;  %v666_v1 = vmul.f32 0.03125, %v644_v5 }
 0x1f3   :  { %v2119_v22 = vpop.eup %2118  ;;  %1991 = vmatprep.mubr.msk.f32.mxu0 %vm191_vm0, %v805_v50  ;;  %v647_v55 = vpop.xlane.xlu0 %646  ;;  %v806_v17 = vadd.f32 %v2872_v56, %v784_v51  ;;  %v785_v60 = vmul.f32 %v2869_v44, %v763_v3  ;;  %v764_v11 = vmul.f32 %v2117_v38, %v710_v52  ;;  %v715_v42 = vsub.f32 %v2757_v33, %v2921_v15 }
 0x1f4   :  { %2132 = vrsqrt.f32 %v737_v30  ;;  %v736_v37 = vadd.f32 1e-05, %v700_v32  ;;  %v702_v31 = vsub.f32 %v666_v1, %v684_v23  ;;  %v667_v46 = vmul.f32 0.03125, %v647_v55 }
 0x1f5   :  { %v2121_v62 = vpop.eup %2120  ;;  %1992 = vmatmul.mubr.msk.f32.gmra.mxu0 %vm191_vm0, %v806_v17  ;;  %v650_v39 = vpop.xlane.xlu1 %649  ;;  %v807_v6 = vadd.f32 %v2872_v56, %v785_v60  ;;  %v786_v20 = vmul.f32 %v2869_v44, %v764_v11  ;;  %v765_v24 = vmul.f32 %v2119_v22, %v711_v63  ;;  %v717_v51 = vsub.f32 %v2779_v8, %v2935_v58 }
 0x1f6   :  { %2134 = vrsqrt.f32 %v736_v37  ;;  %v738_v61 = vadd.f32 1e-05, %v702_v31  ;;  %v703_v21 = vsub.f32 %v667_v46, %v685_v27  ;;  %v668_v52 = vmul.f32 0.03125, %v650_v39 }
 0x1f7   :  { %v2123_v4 = vpop.eup %2122  ;;  %1994 = vmatprep.mubr.msk.f32.mxu0 %vm191_vm0, %v807_v6  ;;  %v808_v41 = vadd.f32 %v2872_v56, %v786_v20  ;;  %v787_v23 = vmul.f32 %v2869_v44, %v765_v24  ;;  %v766_v13 = vmul.f32 %v2121_v62, %v712_v35  ;;  %v716_v35 = vsub.f32 %v2765_v45, %v2927_v49 }
 0x1f8   :  { %2136 = vrsqrt.f32 %v738_v61  ;;  %v739_v63 = vadd.f32 1e-05, %v703_v21  ;;  %v704_v54 = vsub.f32 %v668_v52, %v686_v59  ;;  %v767_v53 = vmul.f32 %v2123_v4, %v713_v57  ;;  %v3043_v4 = vld [vmem:[#allocation8 + $0x8] sm:$0x3] }
 0x1f9   :  { %v2125_v10 = vpop.eup %2124  ;;  %1995 = vmatmul.mubr.msk.f32.gmra.mxu0 %vm191_vm0, %v808_v41  ;;  %v809_v2 = vadd.f32 %v2872_v56, %v787_v23  ;;  %v788_v9 = vmul.f32 %v2869_v44, %v766_v13  ;;  %v719_v32 = vsub.f32 %v2785_v7, %v2942_v28  ;;  %v718_v8 = vsub.f32 %v2793_v12, %v2945_v34 }
 0x1fa   :  { %2138 = vrsqrt.f32 %v739_v63  ;;  %v740_v48 = vadd.f32 1e-05, %v704_v54  ;;  %v789_v38 = vmul.f32 %v2869_v44, %v767_v53  ;;  %v768_v47 = vmul.f32 %v2125_v10, %v714_v25 }
 0x1fb   :  { %v2127_v0 = vpop.eup %2126  ;;  %1997 = vmatprep.mubr.msk.f32.mxu0 %vm191_vm0, %v809_v2  ;;  %v810_v57 = vadd.f32 %v2872_v56, %v788_v9  ;;  %v720_v7 = vsub.f32 %v2799_v18, %v2954_v19  ;;  %v721_v12 = vsub.f32 %v2807_v26, %v2965_v43  ;;  %v722_v18 = vsub.f32 %v2813_v36, %v2969_v14 }
 0x1fc   :  { %2140 = vrsqrt.f32 %v740_v48  ;;  %v811_v33 = vadd.f32 %v2872_v56, %v789_v38  ;;  %v790_v15 = vmul.f32 %v2869_v44, %v768_v47  ;;  %v769_v5 = vmul.f32 %v2127_v0, %v715_v42 }
 0x1fd   :  { %v2129_v50 = vpop.eup %2128  ;;  %1998 = vmatmul.mubr.msk.f32.gmra.mxu0 %vm191_vm0, %v810_v57  ;;  %v828_v41 = vrot.slane %v3043_v4, %v2601_v29 }
 0x1fe   :  { %2000 = vmatprep.mubr.msk.f32.mxu0 %vm191_vm0, %v811_v33  ;;  %v812_v45 = vadd.f32 %v2872_v56, %v790_v15  ;;  %v791_v49 = vmul.f32 %v2869_v44, %v769_v5  ;;  %v770_v3 = vmul.f32 %v2129_v50, %v716_v35 }
 0x1ff   :  { %v2131_v30 = vpop.eup %2130 }
 0x200   :  { %v813_v1 = vadd.f32 %v2872_v56, %v791_v49  ;;  %v792_v22 = vmul.f32 %v2869_v44, %v770_v3  ;;  %v771_v27 = vmul.f32 %v2131_v30, %v717_v51 }
 0x201   :  { %v2133_v55 = vpop.eup %2132  ;;  %2001 = vmatmul.mubr.msk.f32.gmra.mxu0 %vm191_vm0, %v812_v45 }
 0x202   :  { %2003 = vmatprep.mubr.msk.f32.mxu0 %vm191_vm0, %v813_v1  ;;  %v814_v58 = vadd.f32 %v2872_v56, %v792_v22  ;;  %v793_v17 = vmul.f32 %v2869_v44, %v771_v27  ;;  %v773_v60 = vmul.f32 %v2133_v55, %v719_v32 }
 0x203   :  { %v2135_v11 = vpop.eup %2134 }
 0x204   :  { %v815_v28 = vadd.f32 %v2872_v56, %v793_v17  ;;  %v795_v37 = vmul.f32 %v2869_v44, %v773_v60  ;;  %v772_v31 = vmul.f32 %v2135_v11, %v718_v8  ;;  %v2366_v60 = vmov 1966171168  }
 0x205   :  { %v2137_v46 = vpop.eup %2136  ;;  %2004 = vmatmul.mubr.msk.f32.gmra.mxu0 %vm191_vm0, %v814_v58  ;;  %v1058_v11 = vunpack.c.l.s4 %v2366_v60 }
 0x206   :  { %2006 = vmatprep.mubr.msk.f32.mxu0 %vm191_vm0, %v815_v28  ;;  %v817_v34 = vadd.f32 %v2872_v56, %v795_v37  ;;  %v794_v62 = vmul.f32 %v2869_v44, %v772_v31  ;;  %v774_v59 = vmul.f32 %v2137_v46, %v720_v7 }
 0x207   :  { %v2139_v39 = vpop.eup %2138  ;;  %v1059_v7 = vunpack.c.0.s8 %v1058_v11 }
 0x208   :  { %2009 = vmatprep.mubr.msk.f32.mxu1 %vm191_vm0, %v817_v34  ;;  %v816_v19 = vadd.f32 %v2872_v56, %v794_v62  ;;  %v796_v6 = vmul.f32 %v2869_v44, %v774_v59  ;;  %v775_v20 = vmul.f32 %v2139_v39, %v721_v12 }
 0x209   :  { %v2141_v24 = vpop.eup %2140  ;;  %v3120_v28 = vsub.s32 %v1059_v7, %v2594_v16 }
 0x20a   :  { %2007 = vmatmul.mubr.msk.f32.gmra.mxu0 %vm191_vm0, %v816_v19  ;;  %v818_v26 = vadd.f32 %v2872_v56, %v796_v6  ;;  %v797_v43 = vmul.f32 %v2869_v44, %v775_v20  ;;  %v776_v61 = vmul.f32 %v2141_v24, %v722_v18 }
 0x20c   :  { %2010 = vmatmul.mubr.msk.f32.vlgmr.msra.gmra.mxu1 %vm191_vm0, %v818_v26  ;;  %v819_v21 = vadd.f32 %v2872_v56, %v797_v43  ;;  %v798_v36 = vmul.f32 %v2869_v44, %v776_v61 }
 0x20e   :  { %2012 = vmatprep.mubr.msk.f32.mxu1 %vm191_vm0, %v819_v21  ;;  %v820_v14 = vadd.f32 %v2872_v56, %v798_v36 }
 0x210   :  { %2013 = vmatmul.mubr.msk.f32.gmra.mxu1 %vm191_vm0, %v820_v14 }
 0x275   :  { %v1990_v52 = vpop.f32.mrf.mxu0 }
 0x276   :  { %v3097_v32 = vadd.f32 %v1990_v52, %v828_v41 }
 0x277   :  { %v949_v25 = vpop.f32.mrf.mxu0 }
 0x278   :  { %v3115_v17 = vadd.f32 %v949_v25, %v828_v41  ;;  %v1105_v43 = vcombine.high %v3097_v32, %v3097_v32 }
 0x27a   :  { %v1063_v37 = vrot.slane %v3115_v17, %v3120_v28  ;;  %v1056_v12 = vcombine.high %v3115_v17, %v3115_v17  ;;  %v1119_v14 = vrot.slane %v1105_v43, %v3120_v28 }
 0x27c   :  { %v1071_v31 = vcombine.high %v1063_v37, %v1063_v37  ;;  %v1070_v59 = vrot.slane %v1056_v12, %v3120_v28 }
 0x27e   :  { %v1093_v46 = vrot.slane %v1071_v31, %v3120_v28  ;;  %v1072_v20 = vcombine.high %v1070_v59, %v1070_v59  ;;  %v1086_v25 = vrot.slane %v1070_v59, %v3120_v28 }
 0x280   :  { %v1161_v34 = vrot.slane %v1093_v46, %v2601_v29  ;;  %v1103_v62 = vcombine.high %v1093_v46, %v1093_v46  ;;  %v1100_v21 = vrot.slane %v1072_v20, %v3120_v28  ;;  %v1102_v11 = vcombine.high %v1086_v25, %v1086_v25 }
 0x282   :  { %v1169_v19 = vrot.slane %v1103_v62, %v2601_v29  ;;  %v1177_v52 = vrot.slane %v1100_v21, %v2601_v29 }
 0x2b5   :  { %v1993_v23 = vpop.f32.mrf.mxu0 }
 0x2b6   :  { %v3047_v13 = vadd.f32 %v1993_v23, %v828_v41 }
 0x2b7   :  { %v959_v63 = vpop.f32.mrf.mxu0 }
 0x2b8   :  { %1252 = vrot.lane.b32.xlu1 %v3047_v13, %s2365_s6  ;;  %v3087_v49 = vadd.f32 %v959_v63, %v828_v41  ;;  %v1121_v63 = vcombine.high %v1119_v14, %v1119_v14 }
 0x2b9   :  { %v1996_v44 = vpop.f32.mrf.mxu0 }
 0x2ba   :  { %v3051_v54 = vadd.f32 %v1996_v44, %v828_v41  ;;  %v1173_v44 = vrot.slane %v1086_v25, %v2601_v29 }
 0x2bb   :  { %v969_v56 = vpop.f32.mrf.mxu0 }
 0x2bc   :  { %1256 = vrot.lane.b32.xlu1 %v3051_v54, %s2365_s6  ;;  %v3055_v10 = vadd.f32 %v969_v56, %v828_v41 }
 0x2bd   :  { %v1999_v53 = vpop.f32.mrf.mxu0 }
 0x2be   :  { %v3059_v9 = vadd.f32 %v1999_v53, %v828_v41 }
 0x2bf   :  { %v979_v42 = vpop.f32.mrf.mxu0 }
 0x2c0   :  { %1254 = vrot.lane.b32.xlu1 %v3055_v10, %s2365_s6  ;;  %v3063_v38 = vadd.f32 %v979_v42, %v828_v41 }
 0x2c1   :  { %v2002_v2 = vpop.f32.mrf.mxu0 }
 0x2c2   :  { %v3081_v51 = vadd.f32 %v2002_v2, %v828_v41  ;;  %v1149_v2 = vrot.slane %v1121_v63, %v3120_v28 }
 0x2c3   :  { %v989_v48 = vpop.f32.mrf.mxu0 }
 0x2c4   :  { %1260 = vrot.lane.b32.xlu1 %v3059_v9, %s2365_s6  ;;  %v3067_v0 = vadd.f32 %v989_v48, %v828_v41 }
 0x2c5   :  { %v2005_v47 = vpop.f32.mrf.mxu0 }
 0x2c6   :  { %v3095_v30 = vadd.f32 %v2005_v47, %v828_v41 }
 0x2c7   :  { %v999_v35 = vpop.f32.mrf.mxu0 }
 0x2c8   :  { %1258 = vrot.lane.b32.xlu1 %v3063_v38, %s2365_s6  ;;  %v3073_v15 = vadd.f32 %v999_v35, %v828_v41  ;;  %v1209_v35 = vrot.slane %v1149_v2, %v2601_v29 }
 0x2ca   :  { %v2008_v1 = vpop.f32.mrf.mxu0 }
 0x2cb   :  { %v3103_v22 = vadd.f32 %v2008_v1, %v828_v41  ;;  %v1079_v1 = vrot.slane %v1063_v37, %v3120_v28  ;;  %v1181_v37 = vrot.slane %v1102_v11, %v2601_v29 }
 0x2cc   :  { %1262 = vrot.lane.b32.xlu1 %v3067_v0, %s2365_s6  ;;  %v2011_v57 = vpop.f32.mrf.mxu1  ;;  %v1009_v27 = vpop.f32.mrf.mxu0 }
 0x2cd   :  { %v3071_v33 = vadd.f32 %v2011_v57, %v828_v41  ;;  %v3107_v55 = vadd.f32 %v1009_v27, %v828_v41  ;;  %v3144_v57 = vrot.slane %v1119_v14, %v3120_v28  ;;  %v1112_v27 = vrot.slane %v3097_v32, %v3120_v28 }
 0x2ce   :  { %v1019_v5 = vpop.f32.mrf.mxu1  ;;  %v1157_v20 = vrot.slane %v1079_v1, %v2601_v29 }
 0x2cf   :  { %1276 = vrot.lane.b32.xlu0 %v3071_v33, %s2365_s6  ;;  %v3079_v50 = vadd.f32 %v1019_v5, %v828_v41  ;;  %v1205_v31 = vrot.slane %v3144_v57, %v2601_v29 }
 0x2d0   :  { %1266 = vrot.lane.b32.xlu1 %v3073_v15, %s2365_s6  ;;  %v2014_v45 = vpop.f32.mrf.mxu1 }
 0x2d1   :  { %v3089_v3 = vadd.f32 %v2014_v45, %v828_v41  ;;  %v1104_v45 = vcombine.high %v1100_v21, %v1100_v21 }
 0x2d2   :  { %v1029_v8 = vpop.f32.mrf.mxu1 }
 0x2d3   :  { %1274 = vrot.lane.b32.xlu0 %v3079_v50, %s2365_s6  ;;  %v3111_v58 = vadd.f32 %v1029_v8, %v828_v41  ;;  %v1185_v46 = vrot.slane %v1104_v45, %v2601_v29 }
 0x2d4   :  { %1264 = vrot.lane.b32.xlu1 %v3081_v51, %s2365_s6 }
 0x2d7   :  { %1250 = vrot.lane.b32.xlu0 %v3087_v49, %s2365_s6 }
 0x2d8   :  { %1280 = vrot.lane.b32.xlu1 %v3089_v3, %s2365_s6 }
 0x2db   :  { %1268 = vrot.lane.b32.xlu0 %v3095_v30, %s2365_s6 }
 0x2dc   :  { %1042 = vrot.lane.b32.xlu1 %v3097_v32, %s2365_s6 }
 0x2df   :  { %1272 = vrot.lane.b32.xlu0 %v3103_v22, %s2365_s6 }
 0x2e3   :  { %1270 = vrot.lane.b32.xlu0 %v3107_v55, %s2365_s6 }
 0x2e7   :  { %1278 = vrot.lane.b32.xlu0 %v3111_v58, %s2365_s6 }
 0x2eb   :  { %1040 = vrot.lane.b32.xlu0 %v3115_v17, %s2365_s6 }
 0x32a   :  { %v1253_v39 = vpop.permute.xlu1 %1252 }
 0x32b   :  { %v1299_v18 = vmul.f32 %v1253_v39, %v1161_v34  ;;  %v1101_v34 = vcombine.high %v1079_v1, %v1079_v1  ;;  %v1120_v39 = vcombine.high %v1112_v27, %v1112_v27 }
 0x32d   :  { %v1317_v6 = vsel %vm191_vm0, %v1299_v18, 0.0 }
 0x32e   :  { %v1257_v24 = vpop.permute.xlu1 %1256  ;;  %1318 = vadd.xlane.f32.xlu1 %v1317_v6 }
 0x32f   :  { %v1301_v26 = vmul.f32 %v1257_v24, %v1169_v19  ;;  %v1153_v19 = vcombine.high %v1149_v2, %v1149_v2 }
 0x331   :  { %v1323_v61 = vsel %vm191_vm0, %v1301_v26, 0.0  ;;  %v1217_v25 = vrot.slane %v1153_v19, %v2601_v29 }
 0x332   :  { %v1255_v36 = vpop.permute.xlu1 %1254  ;;  %1324 = vadd.xlane.f32.xlu1 %v1323_v61  ;;  %v1165_v61 = vrot.slane %v1101_v34, %v2601_v29 }
 0x336   :  { %v1261_v41 = vpop.permute.xlu1 %1260 }
 0x337   :  { %v1303_v23 = vmul.f32 %v1261_v41, %v1177_v52  ;;  %v1142_v52 = vrot.slane %v1120_v39, %v3120_v28  ;;  %v1300_v41 = vmul.f32 %v1255_v36, %v1165_v61 }
 0x339   :  { %v1329_v56 = vsel %vm191_vm0, %v1303_v23, 0.0  ;;  %v1193_v2 = vrot.slane %v1142_v52, %v2601_v29  ;;  %v1152_v1 = vcombine.high %v1142_v52, %v1142_v52 }
 0x33a   :  { %v1259_v53 = vpop.permute.xlu1 %1258  ;;  %1330 = vadd.xlane.f32.xlu1 %v1329_v56 }
 0x33b   :  { %v1302_v42 = vmul.f32 %v1259_v53, %v1173_v44  ;;  %v1128_v53 = vrot.slane %v1112_v27, %v3120_v28 }
 0x33d   :  { %v1326_v48 = vsel %vm191_vm0, %v1302_v42, 0.0  ;;  %v1189_v45 = vrot.slane %v1128_v53, %v2601_v29 }
 0x33e   :  { %v1263_v47 = vpop.permute.xlu1 %1262  ;;  %1327 = vadd.xlane.f32.xlu1 %v1326_v48 }
 0x33f   :  { %v1304_v24 = vmul.f32 %v1263_v47, %v1181_v37  ;;  %v1320_v47 = vsel %vm191_vm0, %v1300_v41, 0.0 }
 0x341   :  { %v1277_v5 = vpop.permute.xlu0 %1276  ;;  %v1332_v44 = vsel %vm191_vm0, %v1304_v24, 0.0 }
 0x342   :  { %v1267_v8 = vpop.permute.xlu1 %1266  ;;  %v1311_v60 = vmul.f32 %v1277_v5, %v1209_v35 }
 0x344   :  { %v1353_v7 = vsel %vm191_vm0, %v1311_v60, 0.0  ;;  %v1306_v60 = vmul.f32 %v1267_v8, %v1189_v45 }
 0x345   :  { %1354 = vadd.xlane.f32.xlu0 %v1353_v7  ;;  %v1275_v12 = vpop.permute.xlu0 %1274  ;;  %v1201_v7 = vrot.slane %v1152_v1, %v2601_v29 }
 0x346   :  { %v1265_v62 = vpop.permute.xlu1 %1264  ;;  %v1310_v59 = vmul.f32 %v1275_v12, %v1205_v31  ;;  %v1150_v31 = vcombine.high %v1128_v53, %v1128_v53  ;;  %v1338_v12 = vsel %vm191_vm0, %v1306_v60, 0.0 }
 0x347   :  { %v1305_v18 = vmul.f32 %v1265_v62, %v1185_v46  ;;  %v1151_v62 = vcombine.high %v3144_v57, %v3144_v57 }
 0x348   :  { %v1350_v6 = vsel %vm191_vm0, %v1310_v59, 0.0  ;;  %v1197_v34 = vrot.slane %v1150_v31, %v2601_v29 }
 0x349   :  { %v1335_v26 = vsel %vm191_vm0, %v1305_v18, 0.0  ;;  %1351 = vadd.xlane.f32.xlu0 %v1350_v6  ;;  %v1251_v43 = vpop.permute.xlu0 %1250  ;;  %v1213_v37 = vrot.slane %v1151_v62, %v2601_v29 }
 0x34a   :  { %1336 = vadd.xlane.f32.xlu1 %v1335_v26  ;;  %v1281_v21 = vpop.permute.xlu1 %1280  ;;  %v1298_v14 = vmul.f32 %v1251_v43, %v1157_v20 }
 0x34b   :  { %v1313_v63 = vmul.f32 %v1281_v21, %v1217_v25 }
 0x34c   :  { %v1314_v23 = vsel %vm191_vm0, %v1298_v14, 0.0 }
 0x34d   :  { %1315 = vadd.xlane.f32.xlu0 %v1314_v23  ;;  %v1269_v56 = vpop.permute.xlu0 %1268  ;;  %v1359_v36 = vsel %vm191_vm0, %v1313_v63, 0.0 }
 0x34e   :  { %1333 = vadd.xlane.f32.xlu1 %v1332_v44  ;;  %v1043_v42 = vpop.permute.xlu1 %1042  ;;  %v1307_v48 = vmul.f32 %v1269_v56, %v1193_v2 }
 0x34f   :  { %v1047_v35 = vmul.f32 %v1043_v42, %v3097_v32 }
 0x350   :  { %v1341_v28 = vsel %vm191_vm0, %v1307_v48, 0.0 }
 0x351   :  { %1321 = vadd.xlane.f32.xlu0 %v1320_v47  ;;  %v1273_v5 = vpop.permute.xlu0 %1272  ;;  %v1051_v27 = vsel %vm191_vm0, %v1047_v35, 0.0 }
 0x352   :  { %1360 = vadd.xlane.f32.xlu1 %v1359_v36  ;;  %v1309_v46 = vmul.f32 %v1273_v5, %v1201_v7 }
 0x354   :  { %v1347_v39 = vsel %vm191_vm0, %v1309_v46, 0.0 }
 0x355   :  { %1342 = vadd.xlane.f32.xlu0 %v1341_v28  ;;  %v1271_v11 = vpop.permute.xlu0 %1270 }
 0x356   :  { %1052 = vadd.xlane.f32.xlu1 %v1051_v27  ;;  %v1308_v59 = vmul.f32 %v1271_v11, %v1197_v34 }
 0x358   :  { %v1344_v19 = vsel %vm191_vm0, %v1308_v59, 0.0 }
 0x359   :  { %1339 = vadd.xlane.f32.xlu0 %v1338_v12  ;;  %v1279_v8 = vpop.permute.xlu0 %1278 }
 0x35a   :  { %v1312_v18 = vmul.f32 %v1279_v8, %v1213_v37 }
 0x35c   :  { %v1356_v24 = vsel %vm191_vm0, %v1312_v18, 0.0 }
 0x35d   :  { %1348 = vadd.xlane.f32.xlu0 %v1347_v39  ;;  %v1041_v6 = vpop.permute.xlu0 %1040 }
 0x35e   :  { %v1046_v20 = vmul.f32 %v1041_v6, %v3115_v17 }
 0x360   :  { %v1048_v26 = vsel %vm191_vm0, %v1046_v20, 0.0 }
 0x361   :  { %1345 = vadd.xlane.f32.xlu0 %v1344_v19 }
 0x365   :  { %1357 = vadd.xlane.f32.xlu0 %v1356_v24 }
 0x369   :  { %1049 = vadd.xlane.f32.xlu0 %v1048_v26 }
 0x3b7   :  { %v1319_v57 = vpop.xlane.xlu1 %1318 }
 0x3b8   :  { %v1363_v21 = vmul.f32 0.17677669, %v1319_v57 }
 0x3ba   :  { %v1381_v25 = vmul.f32 %v1363_v21, %v3047_v13 }
 0x3bb   :  { %v1325_v43 = vpop.xlane.xlu1 %1324 }
 0x3bc   :  { %v1365_v14 = vmul.f32 0.17677669, %v1325_v43  ;;  %v1404_v44 = vsel %vm1396_vm1, %v1381_v25, 0.0 }
 0x3bd   :  { %v1405_v48 = vrot.slane %v1404_v44, 4 }
 0x3be   :  { %v1383_v41 = vmul.f32 %v1365_v14, %v3051_v54 }
 0x3bf   :  { %v1406_v54 = vadd.f32 %v1405_v48, %v1404_v44 }
 0x3c0   :  { %v1418_v56 = vsel %vm1396_vm1, %v1383_v41, 0.0 }
 0x3c1   :  { %v1419_v47 = vrot.slane %v1418_v56, 4  ;;  %v1407_v7 = vrot.slane %v1406_v54, 2 }
 0x3c3   :  { %v1331_v61 = vpop.xlane.xlu1 %1330  ;;  %v1408_v6 = vadd.f32 %v1407_v7, %v1406_v54 }
 0x3c4   :  { %v1367_v52 = vmul.f32 0.17677669, %v1331_v61 }
 0x3c6   :  { %v1385_v23 = vmul.f32 %v1367_v52, %v3059_v9  ;;  %v1420_v9 = vadd.f32 %v1419_v47, %v1418_v56 }
 0x3c7   :  { %v1328_v29 = vpop.xlane.xlu1 %1327 }
 0x3c8   :  { %v1366_v63 = vmul.f32 0.17677669, %v1328_v29  ;;  %v1432_v53 = vsel %vm1396_vm1, %v1385_v23, 0.0 }
 0x3c9   :  { %v1433_v35 = vrot.slane %v1432_v53, 4 }
 0x3ca   :  { %v1384_v2 = vmul.f32 %v1366_v63, %v3063_v38  ;;  %v1421_v38 = vrot.slane %v1420_v9, 2 }
 0x3cb   :  { %v1434_v1 = vadd.f32 %v1433_v35, %v1432_v53  ;;  %v1409_v53 = vrot.slane %v1408_v6, 1 }
 0x3cc   :  { %v1425_v13 = vsel %vm1396_vm1, %v1384_v2, 0.0  ;;  %v1422_v57 = vadd.f32 %v1421_v38, %v1420_v9 }
 0x3cd   :  { %v1426_v60 = vrot.slane %v1425_v13, 4  ;;  %v1435_v12 = vrot.slane %v1434_v1, 2 }
 0x3ce   :  { %v1355_v42 = vpop.xlane.xlu0 %1354 }
 0x3cf   :  { %v1427_v62 = vadd.f32 %v1426_v60, %v1425_v13  ;;  %v1375_v8 = vmul.f32 0.17677669, %v1355_v42  ;;  %v1436_v43 = vadd.f32 %v1435_v12, %v1434_v1  ;;  %v1423_v42 = vrot.slane %v1422_v57, 1 }
 0x3d1   :  { %v1428_v21 = vrot.slane %v1427_v62, 2  ;;  %v1437_v2 = vrot.slane %v1436_v43, 1 }
 0x3d2   :  { %v1352_v36 = vpop.xlane.xlu0 %1351 }
 0x3d3   :  { %v1337_v5 = vpop.xlane.xlu1 %1336  ;;  %v1374_v37 = vmul.f32 0.17677669, %v1352_v36  ;;  %v1429_v48 = vadd.f32 %v1428_v21, %v1427_v62 }
 0x3d4   :  { %v1369_v45 = vmul.f32 0.17677669, %v1337_v5 }
 0x3d5   :  { %v1392_v25 = vmul.f32 %v1374_v37, %v3079_v50 }
 0x3d6   :  { %v1316_v28 = vpop.xlane.xlu0 %1315  ;;  %v1387_v31 = vmul.f32 %v1369_v45, %v3081_v51 }
 0x3d7   :  { %v1334_v27 = vpop.xlane.xlu1 %1333  ;;  %v1362_v11 = vmul.f32 0.17677669, %v1316_v28  ;;  %v1481_v13 = vsel %vm1396_vm1, %v1392_v25, 0.0  ;;  %v1410_v28 = vadd.f32 %v1409_v53, %v1408_v6 }
 0x3d8   :  { %v1368_v46 = vmul.f32 0.17677669, %v1334_v27  ;;  %v1446_v20 = vsel %vm1396_vm1, %v1387_v31, 0.0  ;;  %v1424_v27 = vadd.f32 %v1423_v42, %v1422_v57  ;;  %v1430_v31 = vrot.slane %v1429_v48, 1 }
 0x3d9   :  { %v1380_v34 = vmul.f32 %v1362_v11, %v3087_v49  ;;  %v1447_v29 = vrot.slane %v1446_v20, 4 }
 0x3da   :  { %v1386_v59 = vmul.f32 %v1368_v46, %v3067_v0  ;;  %v1322_v39 = vpop.xlane.xlu0 %1321  ;;  %v1393_v0 = vmul.f32 %v1375_v8, %v3071_v33  ;;  %v1482_v46 = vrot.slane %v1481_v13, 4  ;;  %v1431_v21 = vadd.f32 %v1430_v31, %v1429_v48 }
 0x3db   :  { %v1397_v18 = vsel %vm1396_vm1, %v1380_v34, 0.0  ;;  %v1364_v19 = vmul.f32 0.17677669, %v1322_v39  ;;  %v1361_v26 = vpop.xlane.xlu1 %1360  ;;  %v1448_v50 = vadd.f32 %v1447_v29, %v1446_v20 }
 0x3dc   :  { %v1439_v24 = vsel %vm1396_vm1, %v1386_v59, 0.0  ;;  %v1398_v51 = vrot.slane %v1397_v18, 4  ;;  %v1377_v41 = vmul.f32 0.17677669, %v1361_v26  ;;  %v1488_v33 = vsel %vm1396_vm1, %v1393_v0, 0.0 }
 0x3dd   :  { %v1440_v61 = vrot.slane %v1439_v24, 4  ;;  %v1382_v49 = vmul.f32 %v1364_v19, %v3055_v10  ;;  %v1489_v11 = vrot.slane %v1488_v33, 4  ;;  %v1438_v59 = vadd.f32 %v1437_v2, %v1436_v43 }
 0x3de   :  { %v1399_v14 = vadd.f32 %v1398_v51, %v1397_v18  ;;  %v1343_v52 = vpop.xlane.xlu0 %1342  ;;  %v1395_v5 = vmul.f32 %v1377_v41, %v3089_v3  ;;  %v1449_v39 = vrot.slane %v1448_v50, 2  ;;  %v1483_v51 = vadd.f32 %v1482_v46, %v1481_v13  ;;  %v1553_v41 = vld [vmem:[#allocation11 + $0x18] sm:$0xff] }
 0x3df   :  { %v1411_v23 = vsel %vm1396_vm1, %v1382_v49, 0.0  ;;  %v1441_v63 = vadd.f32 %v1440_v61, %v1439_v24  ;;  %v1371_v10 = vmul.f32 0.17677669, %v1343_v52  ;;  %v3206_v19 = vadd.f32 %v1489_v11, %v1488_v33  ;;  %2015 = vmatprep.subr.mxu1 %v1553_v41  ;;  %v1551_v33 = vld [vmem:[#allocation11 + $0x8] sm:$0xff] }
 0x3e0   :  { %v1400_v44 = vrot.slane %v1399_v14, 2  ;;  %v1412_v56 = vrot.slane %v1411_v23, 4  ;;  %v1502_v3 = vsel %vm1396_vm1, %v1395_v5, 0.0  ;;  %v1484_v53 = vrot.slane %v1483_v51, 2  ;;  %2016 = vmatpush3.msra.mxu1 %v1553_v41 }
 0x3e1   :  { %v1389_v54 = vmul.f32 %v1371_v10, %v3095_v30  ;;  %v1442_v45 = vrot.slane %v1441_v63, 2  ;;  %v1503_v26 = vrot.slane %v1502_v3, 4 }
 0x3e2   :  { %v1401_v47 = vadd.f32 %v1400_v44, %v1399_v14  ;;  %v1413_v35 = vadd.f32 %v1412_v56, %v1411_v23  ;;  %v1340_v36 = vpop.xlane.xlu0 %1339  ;;  %v1450_v14 = vadd.f32 %v1449_v39, %v1448_v50  ;;  %v1552_v23 = vld [vmem:[#allocation11 + $0x10] sm:$0xff] }
 0x3e3   :  { %v1370_v60 = vmul.f32 0.17677669, %v1340_v36  ;;  %v1460_v7 = vsel %vm1396_vm1, %v1389_v54, 0.0  ;;  %v1443_v37 = vadd.f32 %v1442_v45, %v1441_v63  ;;  %v1504_v42 = vadd.f32 %v1503_v26, %v1502_v3  ;;  %2017 = vmatprep.subr.mxu1 %v1552_v23  ;;  %v1550_v45 = vld [vmem:[#allocation11] sm:$0xff] }
 0x3e4   :  { %v1402_v9 = vrot.slane %v1401_v47, 1  ;;  %v1414_v1 = vrot.slane %v1413_v35, 2  ;;  %v1461_v12 = vrot.slane %v1460_v7, 4  ;;  %v1451_v13 = vrot.slane %v1450_v14, 1  ;;  %2018 = vmatpush3.msra.mxu1 %v1552_v23 }
 0x3e5   :  { %v1388_v30 = vmul.f32 %v1370_v60, %v3073_v15  ;;  %v1444_v52 = vrot.slane %v1443_v37, 1  ;;  %2019 = vmatprep.subr.mxu1 %v1551_v33  ;;  %v1485_v3 = vadd.f32 %v1484_v53, %v1483_v51 }
 0x3e6   :  { %v1415_v38 = vadd.f32 %v1414_v1, %v1413_v35  ;;  %v1349_v34 = vpop.xlane.xlu0 %1348  ;;  %v1403_v62 = vadd.f32 %v1402_v9, %v1401_v47  ;;  %v1462_v6 = vadd.f32 %v1461_v12, %v1460_v7  ;;  %v1491_v9 = vrot.slane %v3206_v19, 2  ;;  %2020 = vmatpush3.msra.mxu1 %v1551_v33 }
 0x3e7   :  { %v1373_v8 = vmul.f32 0.17677669, %v1349_v34  ;;  %v1453_v20 = vsel %vm1396_vm1, %v1388_v30, 0.0  ;;  %2021 = vmatprep.subr.mxu1 %v1550_v45 }
 0x3e8   :  { %v1416_v18 = vrot.slane %v1415_v38, 1  ;;  %v1454_v61 = vrot.slane %v1453_v20, 4  ;;  %v1526_v15 = vsel %vm1525_vm2, %v1410_v28, %v1403_v62  ;;  %v1463_v63 = vrot.slane %v1462_v6, 2  ;;  %2022 = vmatpush3.msra.mxu1 %v1550_v45 }
 0x3e9   :  { %v1391_v24 = vmul.f32 %v1373_v8, %v3103_v22  ;;  %v1452_v62 = vadd.f32 %v1451_v13, %v1450_v14 }
 0x3ea   :  { %v1417_v57 = vadd.f32 %v1416_v18, %v1415_v38  ;;  %v1346_v49 = vpop.xlane.xlu0 %1345  ;;  %v1455_v25 = vadd.f32 %v1454_v61, %v1453_v20  ;;  %v1464_v1 = vadd.f32 %v1463_v63, %v1462_v6  ;;  %v1486_v61 = vrot.slane %v1485_v3, 1 }
 0x3eb   :  { %v1474_v43 = vsel %vm1396_vm1, %v1391_v24, 0.0  ;;  %v1372_v0 = vmul.f32 0.17677669, %v1346_v49 }
 0x3ec   :  { %v1528_v29 = vsel %vm1527_vm3, %v1417_v57, %v1526_v15  ;;  %v1475_v22 = vrot.slane %v1474_v43, 4  ;;  %v1456_v2 = vrot.slane %v1455_v25, 2  ;;  %v1053_v15 = vpop.xlane.xlu1 %1052 }
 0x3ed   :  { %v1390_v44 = vmul.f32 %v1372_v0, %v3107_v55  ;;  %v1530_v56 = vsel %vm1529_vm4, %v1424_v27, %v1528_v29  ;;  %v1445_v55 = vadd.f32 %v1444_v52, %v1443_v37  ;;  %v1505_v27 = vrot.slane %v1504_v42, 2 }
 0x3ee   :  { %v1358_v10 = vpop.xlane.xlu0 %1357  ;;  %v1532_v48 = vsel %vm1531_vm5, %v1431_v21, %v1530_v56  ;;  %v1476_v47 = vadd.f32 %v1475_v22, %v1474_v43  ;;  %v1457_v5 = vadd.f32 %v1456_v2, %v1455_v25  ;;  %v1487_v29 = vadd.f32 %v1486_v61, %v1485_v3 }
 0x3ef   :  { %v1467_v35 = vsel %vm1396_vm1, %v1390_v44, 0.0  ;;  %v1376_v36 = vmul.f32 0.17677669, %v1358_v10  ;;  %v1534_v50 = vsel %vm1533_vm6, %v1438_v59, %v1532_v48  ;;  %v1465_v59 = vrot.slane %v1464_v1, 1 }
 0x3f0   :  { %v1468_v54 = vrot.slane %v1467_v35, 4  ;;  %v1477_v60 = vrot.slane %v1476_v47, 2  ;;  %v1536_v7 = vsel %vm1535_vm7, %v1445_v55, %v1534_v50  ;;  %v1458_v46 = vrot.slane %v1457_v5, 1  ;;  %v3236_v50 = vld [vmem:[#allocation8] sm:$0xff] }
 0x3f1   :  { %v1394_v28 = vmul.f32 %v1376_v36, %v3111_v58  ;;  %v1492_v58 = vadd.f32 %v1491_v9, %v3206_v19  ;;  %v1538_v6 = vsel %vm1537_vm8, %v1452_v62, %v1536_v7  ;;  %v1506_v20 = vadd.f32 %v1505_v27, %v1504_v42  ;;  %v1687_v7 = vld [vmem:[#allocation13 + $0x10] sm:$0xff] }
 0x3f2   :  { %v1469_v11 = vadd.f32 %v1468_v54, %v1467_v35  ;;  %v1050_v31 = vpop.xlane.xlu0 %1049  ;;  %v1478_v38 = vadd.f32 %v1477_v60, %v1476_v47  ;;  %v1459_v24 = vadd.f32 %v1458_v46, %v1457_v5  ;;  %v1466_v43 = vadd.f32 %v1465_v59, %v1464_v1  ;;  %v1685_v46 = vld [vmem:[#allocation13] sm:$0xff] }
 0x3f3   :  { %v1495_v12 = vsel %vm1396_vm1, %v1394_v28, 0.0  ;;  %v1054_v34 = vmul.f32 0.17677669, %v1050_v31  ;;  %v1493_v51 = vrot.slane %v1492_v58, 1  ;;  %v1507_v14 = vrot.slane %v1506_v20, 1  ;;  %v1686_v31 = vld [vmem:[#allocation13 + $0x8] sm:$0xff] }
 0x3f4   :  { %v1470_v30 = vrot.slane %v1469_v11, 2  ;;  %v1496_v8 = vrot.slane %v1495_v12, 4  ;;  %v1479_v26 = vrot.slane %v1478_v38, 1  ;;  %v1055_v25 = vmul.f32 0.17677669, %v1053_v15 }
 0x3f5   :  { %v1378_v39 = vmul.f32 %v1054_v34, %v3115_v17  ;;  %v1539_v17 = vsel %vm1525_vm2, %v1466_v43, %v1459_v24  ;;  %v1494_v63 = vadd.f32 %v1493_v51, %v1492_v58  ;;  %v1508_v53 = vadd.f32 %v1507_v14, %v1506_v20 }
 0x3f6   :  { %v1471_v37 = vadd.f32 %v1470_v30, %v1469_v11  ;;  %v1497_v18 = vadd.f32 %v1496_v8, %v1495_v12  ;;  %v1480_v52 = vadd.f32 %v1479_v26, %v1478_v38  ;;  %v1379_v2 = vmul.f32 %v1055_v25, %v3097_v32  ;;  %v1688_v11 = vld [vmem:[#allocation13 + $0x18] sm:$0xff]  ;;  %v1788_v25 = vld [vmem:[#allocation14 + $0x10] sm:$0xff] }
 0x3f7   :  { %v1548_v57 = vadd.f32 %v1538_v6, %v1378_v39  ;;  %v1556_v36 = vsub.s32 6, %v2594_v16  ;;  %2026 = vmatprep.subr.mxu1 %v1688_v11  ;;  %v1675_v24 = vsub.s32 4, %v2594_v16  ;;  %v1681_v26 = vsub.s32 5, %v2594_v16 }
 0x3f8   :  { %v1472_v49 = vrot.slane %v1471_v37, 1  ;;  %v1498_v21 = vrot.slane %v1497_v18, 2 }
 0x3f9   :  { %1560 = vrot.lane.b32.xlu0 %v1548_v57, %s2367_s7  ;;  %v1557_v13 = vrot.slane %v3236_v50, %v1556_v36  ;;  %v1676_v61 = vrot.slane %v3236_v50, %v1675_v24  ;;  %v1682_v15 = vrot.slane %v3236_v50, %v1681_v26 }
 0x3fa   :  { %v1473_v19 = vadd.f32 %v1472_v49, %v1471_v37  ;;  %v1499_v0 = vadd.f32 %v1498_v21, %v1497_v18 }
 0x3fc   :  { %v1540_v41 = vsel %vm1527_vm3, %v1473_v19, %v1539_v17  ;;  %v1500_v23 = vrot.slane %v1499_v0, 1 }
 0x3fd   :  { %v1541_v22 = vsel %vm1529_vm4, %v1480_v52, %v1540_v41  ;;  %v1787_v41 = vld [vmem:[#allocation14 + $0x8] sm:$0xff] }
 0x3fe   :  { %v1501_v44 = vadd.f32 %v1500_v23, %v1499_v0  ;;  %v1542_v56 = vsel %vm1531_vm5, %v1487_v29, %v1541_v22  ;;  %v1789_v29 = vld [vmem:[#allocation14 + $0x18] sm:$0xff]  ;;  %v1786_v23 = vld [vmem:[#allocation14] sm:$0xff] }
 0x3ff   :  { %v1543_v42 = vsel %vm1533_vm6, %v1494_v63, %v1542_v56  ;;  %v1692_v63 = vrot.slane %v3043_v4, %v487_v40  ;;  %v1792_v40 = vsub.s32 7, %v2594_v16 }
 0x400   :  { %v1544_v10 = vsel %vm1535_vm7, %v1501_v44, %v1543_v42 }
 0x401   :  { %v1545_v48 = vsel %vm1537_vm8, %v1508_v53, %v1544_v10  ;;  %v1793_v4 = vrot.slane %v3236_v50, %v1792_v40 }
 0x402   :  { %v1549_v33 = vadd.f32 %v1545_v48, %v1379_v2 }
 0x404   :  { %1562 = vrot.lane.b32.xlu1 %v1549_v33, %s2367_s7 }
 0x46b   :  { %v1561_v47 = vpop.permute.xlu0 %1560 }
 0x46c   :  { %2023 = vmatprep.mubr.msk.f32.mxu1 %vm191_vm0, %v1561_v47 }
 0x476   :  { %v1563_v35 = vpop.permute.xlu1 %1562 }
 0x477   :  { %2024 = vmatmul.mubr.msk.f32.vlgmr.msra.gmra.mxu1 %vm191_vm0, %v1563_v35 }
 0x478   :  { %2027 = vmatpush3.msra.mxu1 %v1688_v11 }
 0x479   :  { %2028 = vmatprep.subr.mxu1 %v1687_v7 }
 0x47a   :  { %2029 = vmatpush3.msra.mxu1 %v1687_v7 }
 0x47b   :  { %2030 = vmatprep.subr.mxu1 %v1686_v31 }
 0x47c   :  { %2031 = vmatpush3.msra.mxu1 %v1686_v31 }
 0x47d   :  { %2032 = vmatprep.subr.mxu1 %v1685_v46 }
 0x47e   :  { %2033 = vmatpush3.msra.mxu1 %v1685_v46 }
 0x47f   :  { %2037 = vmatprep.subr.mxu1 %v1789_v29 }
 0x537   :  { %v2025_v55 = vpop.f32.mrf.mxu1 }
 0x538   :  { %v3239_v32 = vadd.f32 %v2025_v55, %v1557_v13 }
 0x539   :  { %v1634_v5 = vpop.f32.mrf.mxu1 }
 0x53a   :  { %v3241_v54 = vadd.f32 %v1634_v5, %v1557_v13  ;;  %v1646_v45 = vsel %vm191_vm0, %v3239_v32, 0.0  ;;  %v1652_v60 = vmul.f32 %v3239_v32, %v3239_v32 }
 0x53b   :  { %1647 = vadd.xlane.f32.xlu0 %v1646_v45 }
 0x53c   :  { %v1643_v9 = vsel %vm191_vm0, %v3241_v54, 0.0  ;;  %v1651_v1 = vmul.f32 %v3241_v54, %v3241_v54  ;;  %v1656_v27 = vsel %vm191_vm0, %v1652_v60, 0.0 }
 0x53d   :  { %1644 = vadd.xlane.f32.xlu1 %v1643_v9 }
 0x53e   :  { %v1653_v28 = vsel %vm191_vm0, %v1651_v1, 0.0 }
 0x53f   :  { %1654 = vadd.xlane.f32.xlu0 %v1653_v28 }
 0x541   :  { %1657 = vadd.xlane.f32.xlu1 %v1656_v27 }
 0x5c4   :  { %v1648_v38 = vpop.xlane.xlu0 %1647 }
 0x5c5   :  { %v1650_v34 = vmul.f32 0.03125, %v1648_v38 }
 0x5c6   :  { %v1645_v12 = vpop.xlane.xlu1 %1644 }
 0x5c7   :  { %v1649_v62 = vmul.f32 0.03125, %v1645_v12  ;;  %v1662_v59 = vmul.f32 %v1650_v34, %v1650_v34  ;;  %v1666_v21 = vsub.f32 %v3239_v32, %v1650_v34 }
 0x5c8   :  { %v1655_v3 = vpop.xlane.xlu0 %1654 }
 0x5c9   :  { %v1661_v30 = vmul.f32 %v1649_v62, %v1649_v62  ;;  %v1659_v8 = vmul.f32 0.03125, %v1655_v3  ;;  %v1665_v57 = vsub.f32 %v3241_v54, %v1649_v62 }
 0x5ca   :  { %v1658_v58 = vpop.xlane.xlu1 %1657 }
 0x5cb   :  { %v1663_v39 = vsub.f32 %v1659_v8, %v1661_v30  ;;  %v1660_v37 = vmul.f32 0.03125, %v1658_v58 }
 0x5cd   :  { %v1667_v18 = vadd.f32 1e-05, %v1663_v39  ;;  %v1664_v6 = vsub.f32 %v1660_v37, %v1662_v59 }
 0x5cf   :  { %2142 = vrsqrt.f32 %v1667_v18  ;;  %v1668_v20 = vadd.f32 1e-05, %v1664_v6 }
 0x5d1   :  { %2144 = vrsqrt.f32 %v1668_v20 }
 0x5dc   :  { %v2143_v49 = vpop.eup %2142 }
 0x5dd   :  { %v1671_v51 = vmul.f32 %v2143_v49, %v1665_v57 }
 0x5de   :  { %v2145_v43 = vpop.eup %2144 }
 0x5df   :  { %v1672_v19 = vmul.f32 %v2145_v43, %v1666_v21  ;;  %v1677_v0 = vmul.f32 %v1676_v61, %v1671_v51 }
 0x5e1   :  { %v1678_v14 = vmul.f32 %v1676_v61, %v1672_v19  ;;  %v1683_v17 = vadd.f32 %v1682_v15, %v1677_v0 }
 0x5e3   :  { %v1684_v52 = vadd.f32 %v1682_v15, %v1678_v14  ;;  %2034 = vmatprep.mubr.msk.f32.mxu1 %vm191_vm0, %v1683_v17 }
 0x5e5   :  { %2035 = vmatmul.mubr.msk.f32.vlgmr.msra.gmra.mxu1 %vm191_vm0, %v1684_v52 }
 0x5e6   :  { %2038 = vmatpush3.msra.mxu1 %v1789_v29 }
 0x5e7   :  { %2039 = vmatprep.subr.mxu1 %v1788_v25 }
 0x5e8   :  { %2040 = vmatpush3.msra.mxu1 %v1788_v25 }
 0x5e9   :  { %2041 = vmatprep.subr.mxu1 %v1787_v41 }
 0x5ea   :  { %2042 = vmatpush3.msra.mxu1 %v1787_v41 }
 0x5eb   :  { %2043 = vmatprep.subr.mxu1 %v1786_v23 }
 0x5ec   :  { %2044 = vmatpush3.msra.mxu1 %v1786_v23 }
 0x6a5   :  { %v2036_v22 = vpop.f32.mrf.mxu1 }
 0x6a6   :  { %v1771_v44 = vadd.f32 %v2036_v22, %v1692_v63 }
 0x6a7   :  { %v1765_v56 = vpop.f32.mrf.mxu1 }
 0x6a8   :  { %v1935_v53 = vmul.f32 -1.442695, %v1771_v44  ;;  %v1766_v42 = vadd.f32 %v1765_v56, %v1692_v63 }
 0x6aa   :  { %2146 = vpow2.f32 %v1935_v53  ;;  %v1934_v2 = vmul.f32 -1.442695, %v1766_v42 }
 0x6ac   :  { %2148 = vpow2.f32 %v1934_v2 }
 0x6b7   :  { %v2147_v10 = vpop.eup %2146 }
 0x6b8   :  { %v1781_v33 = vadd.f32 1.0, %v2147_v10 }
 0x6b9   :  { %v2149_v48 = vpop.eup %2148 }
 0x6ba   :  { %v1780_v47 = vadd.f32 1.0, %v2149_v48 }
 0x6bc   :  { %2150 = vrcp.f32 %v1780_v47 }
 0x6bd   :  { %2152 = vrcp.f32 %v1781_v33 }
 0x6c9   :  { %v2151_v35 = vpop.eup %2150 }
 0x6ca   :  { %v2153_v36 = vpop.eup %2152  ;;  %2045 = vmatprep.mubr.msk.f32.mxu1 %vm191_vm0, %v2151_v35 }
 0x6cb   :  { %2046 = vmatmul.mubr.msk.f32.vlgmr.msra.gmra.mxu1 %vm191_vm0, %v2153_v36 }
 0x78b   :  { %v2047_v13 = vpop.f32.mrf.mxu1 }
 0x78c   :  { %v1872_v55 = vadd.f32 %v2047_v13, %v1793_v4 }
 0x78d   :  { %v1866_v5 = vpop.f32.mrf.mxu1 }
 0x78e   :  { %v1939_v45 = vmul.f32 -1.442695, %v1872_v55  ;;  %v1867_v9 = vadd.f32 %v1866_v5, %v1793_v4 }
 0x790   :  { %2154 = vpow2.f32 %v1939_v45  ;;  %v1938_v1 = vmul.f32 -1.442695, %v1867_v9 }
 0x792   :  { %2156 = vpow2.f32 %v1938_v1 }
 0x79d   :  { %v2155_v60 = vpop.eup %2154 }
 0x79e   :  { %v1882_v28 = vadd.f32 1.0, %v2155_v60 }
 0x79f   :  { %v2157_v27 = vpop.eup %2156 }
 0x7a0   :  { %2158 = vrcp.f32 %v1882_v28  ;;  %v1881_v11 = vadd.f32 1.0, %v2157_v27 }
 0x7a2   :  { %2160 = vrcp.f32 %v1881_v11 }
 0x7ad   :  { %v2159_v7 = vpop.eup %2158 }
 0x7ae   :  { %v1888_v16 = vadd.f32 %v2159_v7, %v3239_v32 }
 0x7af   :  { %v2161_v50 = vpop.eup %2160 }
 0x7b0   :  { %v1887_v31 = vadd.f32 %v2161_v50, %v3241_v54  ;;  %1890 = vst.msk [vmem:[#allocation16 + $0x8] sm:$0xff] %vm191_vm0, %v1888_v16 }
 0x7b2   :  { %1889 = vst.msk [vmem:[#allocation16] sm:$0xff] %vm191_vm0, %v1887_v31 }
 0x7b3   :  { %2334 = shalt.err (!%p2331_p2)
}
 0x7b4   :  { %1902 = dma.vmem_to_hbm [thread:$0]  %s1897_s21, 256, %s3286_s8, [#allocation4], %s2357_s10, %s2357_s10, %s2358_s11  }
 0x7b5   :  { %2353 = dma.done.wait [#allocation4], 256  }
 0x7b6   :  { %2354 = vsyncadd [#allocation4], 4294967040 }
 0x7b7   :  { %1906 = vsyncpa [#allocation3], 1 }
 0x7b8   :  { %1907 = vsyncpa [#allocation6], 1 }
 0x7b9   :  { %1908 = vsyncpa [#allocation9], 1 }
 0x7ba   :  { %1909 = vsyncpa [#allocation12], 1 }
 0x7bb   :  { %1910 = vsyncpa [#allocation15], 1 }
 0x7bc   :  { %1911 = vsyncpa [#allocation4], 1 }

</bundles_post_ra>
